<compile_context>
chip_gen: v7x
topology: tpu7x:2x2x1
jax: 0.10.0
libtpu: 0.0.40
codegen_flags: <defaults>
</compile_context>

<pallas_src>
import jax
import jax.numpy as jnp
import numpy as np
from jax.experimental import pallas as pl
from jax.experimental.pallas import tpu as pltpu

EPS = 1e-5


def _bn(x, gamma, beta):
    # BatchNorm1d in training mode: per-column batch statistics, biased variance.
    mean = jnp.mean(x, axis=0, keepdims=True)
    var = jnp.mean((x - mean) ** 2, axis=0, keepdims=True)
    return (x - mean) * (gamma * jax.lax.rsqrt(var + EPS)) + beta


def _prelu(x, a):
    return jnp.where(x >= 0, x, a * x)


# ---------------------------------------------------------------------------
# Fused kernel: all block AEs + block hazards + common encoder + common hazard.
# Whole batch and all (block-diagonal) params are resident in VMEM.
# ---------------------------------------------------------------------------
def fused_kernel(x_ref, w1_ref, w2_ref, wd1_ref, wd2_ref, wh_ref, wc_ref,
                 vh_ref, ve_ref, bd2_ref, vc_ref, hb_ref,
                 common_ref, dec_ref, haz_ref, enc_ref):
    x = x_ref[...]            # [B, nb*d_b]
    vh = vh_ref[...]          # [8, nb*H] : b1, a_e, g_e, be_e, bd1, a_d, g_d1, be_d1
    ve = ve_ref[...]          # [5, nb*E] : b2, g_d0, be_d0, g_h, be_h
    vc = vc_ref[...]          # [4, CE]   : bc, g_hc, be_hc, whc

    # --- block encoders (all blocks at once via block-diagonal weights) ---
    h = jnp.dot(x, w1_ref[...], preferred_element_type=jnp.float32) + vh[0:1, :]
    h = _prelu(h, vh[1:2, :])
    h = _bn(h, vh[2:3, :], vh[3:4, :])
    enc = jnp.dot(h, w2_ref[...], preferred_element_type=jnp.float32) + ve[0:1, :]
    common_ref[...] = enc                       # single lane-dense store (nb*E lanes)

    # --- shared BN stats on the embedding slab (decoder BN + hazard BN) ---
    mean = jnp.mean(enc, axis=0, keepdims=True)
    var = jnp.mean((enc - mean) ** 2, axis=0, keepdims=True)
    enc_norm = (enc - mean) * jax.lax.rsqrt(var + EPS)

    # --- block decoders: BN -> Linear -> PReLU -> BN -> Linear ---
    d = enc_norm * ve[1:2, :] + ve[2:3, :]
    d = jnp.dot(d, wd1_ref[...], preferred_element_type=jnp.float32) + vh[4:5, :]
    d = _prelu(d, vh[5:6, :])
    d = _bn(d, vh[6:7, :], vh[7:8, :])
    dec_ref[...] = (jnp.dot(d, wd2_ref[...], preferred_element_type=jnp.float32)
                    + bd2_ref[...])

    # --- block hazards: BN (reused stats) -> block-diagonal Linear(E,1) x nb ---
    hz_in = enc_norm * ve[3:4, :] + ve[4:5, :]
    block_haz = jnp.dot(hz_in, wh_ref[...], preferred_element_type=jnp.float32)  # [B, nb]

    # --- common encoder: Linear(nb*E, CE) directly on the in-vreg slab ---
    encoded = jnp.dot(enc, wc_ref[...], preferred_element_type=jnp.float32) + vc[0:1, :]
    enc_ref[...] = encoded

    # --- common hazard: BN -> Linear(CE, 1) as VPU mul + lane reduce ---
    hzc = _bn(encoded, vc[1:2, :], vc[2:3, :])
    common_haz = jnp.sum(hzc * vc[3:4, :], axis=-1, keepdims=True)

    # --- single store for all hazards (block hazards + common hazard) ---
    haz_ref[...] = jnp.concatenate([block_haz, common_haz], axis=1) + hb_ref[...]


# ---------------------------------------------------------------------------
# Wrapper
# ---------------------------------------------------------------------------
def run_fused(x, pk):
    B = x.shape[0]
    nbd = pk["w1"].shape[0]          # nb * d_b
    nbE = pk["w2"].shape[1]          # nb * E
    nb = pk["wh"].shape[1]
    CE = pk["wc"].shape[1]

    ins = [x, pk["w1"], pk["w2"], pk["wd1"], pk["wd2"], pk["wh"], pk["wc"],
           pk["vh"], pk["ve"], pk["bd2"], pk["vc"], pk["hb"]]
    in_specs = [pl.BlockSpec(memory_space=pltpu.MemorySpace.VMEM) for _ in ins]
    out_shapes = (jax.ShapeDtypeStruct((B, nbE), jnp.float32),     # original_common
                  jax.ShapeDtypeStruct((B, nbd), jnp.float32),     # blocks decoded
                  jax.ShapeDtypeStruct((B, nb + 1), jnp.float32),  # hazards (blocks + common)
                  jax.ShapeDtypeStruct((B, CE), jnp.float32))      # encoded
    out_specs = tuple(pl.BlockSpec(memory_space=pltpu.MemorySpace.VMEM)
                      for _ in out_shapes)
    # TODO(synk): for large B, add a batch grid (dimension_semantics=("parallel",))
    # and bf16 matmul operands; at B=8 the gridless all-resident form is fastest.
    return pl.pallas_call(
        fused_kernel,
        in_specs=in_specs,
        out_specs=out_specs,
        out_shape=out_shapes,
    )(*ins)


def forward(x, pk, nb, d_b):
    """Full HierarchicalSAEEncodeOnly forward (blocks = contiguous slices)."""
    common, dec, haz, encoded = run_fused(x, pk)
    original_blocks = [x[:, i * d_b:(i + 1) * d_b] for i in range(nb)]
    blocks_decoded = [dec[:, i * d_b:(i + 1) * d_b] for i in range(nb)]
    block_hazards = [haz[:, i:i + 1] for i in range(nb)]
    hazard = haz[:, nb:nb + 1]
    return hazard, original_blocks, blocks_decoded, block_hazards, encoded, common


# ---------------------------------------------------------------------------
# Parameter packing: block-diagonal weights + per-column lane vectors
# ---------------------------------------------------------------------------
def _block_diag(w):
    nb, r, c = w.shape
    out = jnp.zeros((nb * r, nb * c), w.dtype)
    for i in range(nb):
        out = out.at[i * r:(i + 1) * r, i * c:(i + 1) * c].set(w[i])
    return out


def pack_params(p):
    nb, d_b, H = p["w1"].shape
    E = p["w2"].shape[2]

    row = lambda v: v.reshape(1, -1)                          # [nb,1,N] -> [1, nb*N]
    slope = lambda a: jnp.repeat(a.reshape(nb), H).reshape(1, nb * H)

    vh = jnp.concatenate([row(p["b1"]), slope(p["a_e"]), row(p["g_e"]), row(p["be_e"]),
                          row(p["bd1"]), slope(p["a_d"]), row(p["g_d1"]), row(p["be_d1"])],
                         axis=0)                              # [8, nb*H]
    ve = jnp.concatenate([row(p["b2"]), row(p["g_d0"]), row(p["be_d0"]),
                          row(p["g_h"]), row(p["be_h"])], axis=0)      # [5, nb*E]
    vc = jnp.concatenate([p["bc"], p["g_hc"], p["be_hc"], p["whc"].T], axis=0)  # [4, CE]
    hb = jnp.concatenate([p["bh"].reshape(nb), p["bhc"].reshape(1)]).reshape(1, nb + 1)

    return dict(
        w1=_block_diag(p["w1"]),       # [nb*d_b, nb*H]
        w2=_block_diag(p["w2"]),       # [nb*H,  nb*E]
        wd1=_block_diag(p["wd1"]),     # [nb*E,  nb*H]
        wd2=_block_diag(p["wd2"]),     # [nb*H,  nb*d_b]
        wh=_block_diag(p["wh"]),       # [nb*E,  nb]
        wc=p["wc"],                    # [nb*E,  CE]
        vh=vh, ve=ve, bd2=row(p["bd2"]), vc=vc, hb=hb)


# ---------------------------------------------------------------------------
# Pure-JAX reference (correctness check only)
# ---------------------------------------------------------------------------
def forward_ref(x, p, nb, d_b):
    outs = []
    for i in range(nb):
        xi = x[:, i * d_b:(i + 1) * d_b]
        h = xi @ p["w1"][i] + p["b1"][i]
        h = _prelu(h, p["a_e"][i, 0, 0])
        h = _bn(h, p["g_e"][i], p["be_e"][i])
        enc = h @ p["w2"][i] + p["b2"][i]
        d = _bn(enc, p["g_d0"][i], p["be_d0"][i])
        d = d @ p["wd1"][i] + p["bd1"][i]
        d = _prelu(d, p["a_d"][i, 0, 0])
        d = _bn(d, p["g_d1"][i], p["be_d1"][i])
        dec = d @ p["wd2"][i] + p["bd2"][i]
        hz = _bn(enc, p["g_h"][i], p["be_h"][i]) @ p["wh"][i] + p["bh"][i]
        outs.append((enc, dec, hz))
    common = jnp.concatenate([o[0] for o in outs], axis=1)
    encoded = common @ p["wc"] + p["bc"]
    hazard = _bn(encoded, p["g_hc"], p["be_hc"]) @ p["whc"] + p["bhc"]
    return hazard, [o[1] for o in outs], [o[2] for o in outs], encoded, common


# ---------------------------------------------------------------------------
# Deterministic parameter init (synthetic, not a checkpoint load)
# ---------------------------------------------------------------------------
def init_params(key, nb, d_b, H, E, CE):
    ks = iter(jax.random.split(key, 40))

    def w(shape, scale=0.1):
        return jax.random.normal(next(ks), shape, jnp.float32) * scale

    def gamma(shape):
        return 1.0 + 0.05 * jax.random.normal(next(ks), shape, jnp.float32)

    return dict(
        # block encoder
        w1=w((nb, d_b, H)), b1=w((nb, 1, H)),
        a_e=jnp.full((nb, 1, 1), 0.25, jnp.float32),
        g_e=gamma((nb, 1, H)), be_e=w((nb, 1, H)),
        w2=w((nb, H, E)), b2=w((nb, 1, E)),
        # block decoder
        g_d0=gamma((nb, 1, E)), be_d0=w((nb, 1, E)),
        wd1=w((nb, E, H)), bd1=w((nb, 1, H)),
        a_d=jnp.full((nb, 1, 1), 0.25, jnp.float32),
        g_d1=gamma((nb, 1, H)), be_d1=w((nb, 1, H)),
        wd2=w((nb, H, d_b)), bd2=w((nb, 1, d_b)),
        # block hazard
        g_h=gamma((nb, 1, E)), be_h=w((nb, 1, E)),
        wh=w((nb, E, 1)), bh=w((nb, 1, 1)),
        # common encoder + hazard
        wc=w((nb * E, CE)), bc=w((1, CE)),
        g_hc=gamma((1, CE)), be_hc=w((1, CE)),
        whc=w((CE, 1)), bhc=w((1, 1)),
    )


if __name__ == "__main__":
    nb, d_b, B = 4, 16, 8          # 4 blocks of 16 features -> x is [8, 64]
    H, E, CE = 128, 64, 64         # block hidden, block embedding, common embedding

    key = jax.random.PRNGKey(0)
    kx, kp = jax.random.split(key)
    x = jax.random.normal(kx, (B, nb * d_b), jnp.float32)
    params = init_params(kp, nb, d_b, H, E, CE)
    packed = pack_params(params)

    out = forward(x, packed, nb, d_b)
    jax.block_until_ready(out)
    hazard, orig_blocks, blocks_dec, block_haz, encoded, common = out

    r_haz, r_dec, r_bhaz, r_enc, r_common = forward_ref(x, params, nb, d_b)
    assert np.allclose(np.asarray(hazard), np.asarray(r_haz), rtol=1e-4, atol=1e-4)
    assert np.allclose(np.asarray(encoded), np.asarray(r_enc), rtol=1e-4, atol=1e-4)
    assert np.allclose(np.asarray(common), np.asarray(r_common), rtol=1e-4, atol=1e-4)
    for i in range(nb):
        assert np.allclose(np.asarray(blocks_dec[i]), np.asarray(r_dec[i]),
                           rtol=1e-4, atol=1e-4)
        assert np.allclose(np.asarray(block_haz[i]), np.asarray(r_bhaz[i]),
                           rtol=1e-4, atol=1e-4)
        assert np.allclose(np.asarray(orig_blocks[i]),
                           np.asarray(x[:, i * d_b:(i + 1) * d_b]))

    print("KERNEL_OK")
</pallas_src>

<mosaic_0001>
module attributes {stable_mosaic.version = 11 : i64} {
  func.func @fused_kernel(%arg0: memref<8x64xf32, #tpu.memory_space<vmem>>, %arg1: memref<64x512xf32, #tpu.memory_space<vmem>>, %arg2: memref<512x256xf32, #tpu.memory_space<vmem>>, %arg3: memref<256x512xf32, #tpu.memory_space<vmem>>, %arg4: memref<512x64xf32, #tpu.memory_space<vmem>>, %arg5: memref<256x4xf32, #tpu.memory_space<vmem>>, %arg6: memref<256x64xf32, #tpu.memory_space<vmem>>, %arg7: memref<8x512xf32, #tpu.memory_space<vmem>>, %arg8: memref<5x256xf32, #tpu.memory_space<vmem>>, %arg9: memref<1x64xf32, #tpu.memory_space<vmem>>, %arg10: memref<4x64xf32, #tpu.memory_space<vmem>>, %arg11: memref<1x5xf32, #tpu.memory_space<vmem>>, %arg12: memref<8x256xf32, #tpu.memory_space<vmem>>, %arg13: memref<8x64xf32, #tpu.memory_space<vmem>>, %arg14: memref<8x5xf32, #tpu.memory_space<vmem>>, %arg15: memref<8x64xf32, #tpu.memory_space<vmem>>) attributes {dimension_semantics = [], scalar_prefetch = 0 : i64, scratch_operands = 0 : i64, tpu.core_type = #tpu.core_type<tc>} {
    %c0 = arith.constant 0 : index
    %c0_0 = arith.constant 0 : index
    %0 = vector.load %arg0[%c0, %c0_0] : memref<8x64xf32, #tpu.memory_space<vmem>>, vector<8x64xf32>
    %c0_1 = arith.constant 0 : index
    %c0_2 = arith.constant 0 : index
    %1 = vector.load %arg7[%c0_1, %c0_2] : memref<8x512xf32, #tpu.memory_space<vmem>>, vector<8x512xf32>
    %c0_3 = arith.constant 0 : index
    %c0_4 = arith.constant 0 : index
    %2 = vector.load %arg8[%c0_3, %c0_4] : memref<5x256xf32, #tpu.memory_space<vmem>>, vector<5x256xf32>
    %c0_5 = arith.constant 0 : index
    %c0_6 = arith.constant 0 : index
    %3 = vector.load %arg10[%c0_5, %c0_6] : memref<4x64xf32, #tpu.memory_space<vmem>>, vector<4x64xf32>
    %c0_7 = arith.constant 0 : index
    %c0_8 = arith.constant 0 : index
    %4 = vector.load %arg1[%c0_7, %c0_8] : memref<64x512xf32, #tpu.memory_space<vmem>>, vector<64x512xf32>
    %cst = arith.constant dense<0.000000e+00> : vector<8x512xf32>
    %5 = tpu.matmul %0, %4, %cst {dimension_numbers = #tpu.dot_dimension_numbers<[1], [0], [0], [1], [0, 0, 1, 1], [], []>} : vector<8x64xf32>, vector<64x512xf32>, vector<8x512xf32> -> vector<8x512xf32>
    %6 = vector.extract_strided_slice %1 {offsets = [0, 0], sizes = [1, 512], strides = [1, 1]} : vector<8x512xf32> to vector<1x512xf32>
    %7 = vector.broadcast %6 : vector<1x512xf32> to vector<8x512xf32>
    %8 = arith.addf %5, %7 : vector<8x512xf32>
    %9 = vector.extract_strided_slice %1 {offsets = [1, 0], sizes = [1, 512], strides = [1, 1]} : vector<8x512xf32> to vector<1x512xf32>
    %cst_9 = arith.constant 0.000000e+00 : f32
    %10 = vector.broadcast %cst_9 : f32 to vector<8x512xf32>
    %11 = arith.cmpf oge, %8, %10 : vector<8x512xf32>
    %12 = vector.broadcast %9 : vector<1x512xf32> to vector<8x512xf32>
    %13 = arith.mulf %12, %8 : vector<8x512xf32>
    %14 = arith.select %11, %8, %13 : vector<8x512xi1>, vector<8x512xf32>
    %15 = vector.extract_strided_slice %1 {offsets = [2, 0], sizes = [1, 512], strides = [1, 1]} : vector<8x512xf32> to vector<1x512xf32>
    %16 = vector.extract_strided_slice %1 {offsets = [3, 0], sizes = [1, 512], strides = [1, 1]} : vector<8x512xf32> to vector<1x512xf32>
    %cst_10 = arith.constant dense<0.000000e+00> : vector<512xf32>
    %17 = vector.multi_reduction <add>, %14, %cst_10 [0] : vector<8x512xf32> to vector<512xf32>
    %18 = vector.shape_cast %17 : vector<512xf32> to vector<1x512xf32>
    %cst_11 = arith.constant 8.000000e+00 : f32
    %19 = vector.broadcast %cst_11 : f32 to vector<1x512xf32>
    %20 = arith.divf %18, %19 : vector<1x512xf32>
    %21 = vector.broadcast %20 : vector<1x512xf32> to vector<8x512xf32>
    %22 = arith.subf %14, %21 : vector<8x512xf32>
    %23 = arith.mulf %22, %22 : vector<8x512xf32>
    %cst_12 = arith.constant dense<0.000000e+00> : vector<512xf32>
    %24 = vector.multi_reduction <add>, %23, %cst_12 [0] : vector<8x512xf32> to vector<512xf32>
    %25 = vector.shape_cast %24 : vector<512xf32> to vector<1x512xf32>
    %cst_13 = arith.constant 8.000000e+00 : f32
    %26 = vector.broadcast %cst_13 : f32 to vector<1x512xf32>
    %27 = arith.divf %25, %26 : vector<1x512xf32>
    %28 = vector.broadcast %20 : vector<1x512xf32> to vector<8x512xf32>
    %29 = arith.subf %14, %28 : vector<8x512xf32>
    %cst_14 = arith.constant 9.99999974E-6 : f32
    %30 = vector.broadcast %cst_14 : f32 to vector<1x512xf32>
    %31 = arith.addf %27, %30 : vector<1x512xf32>
    %32 = math.rsqrt %31 : vector<1x512xf32>
    %33 = arith.mulf %15, %32 : vector<1x512xf32>
    %34 = vector.broadcast %33 : vector<1x512xf32> to vector<8x512xf32>
    %35 = arith.mulf %29, %34 : vector<8x512xf32>
    %36 = vector.broadcast %16 : vector<1x512xf32> to vector<8x512xf32>
    %37 = arith.addf %35, %36 : vector<8x512xf32>
    %c0_15 = arith.constant 0 : index
    %c0_16 = arith.constant 0 : index
    %38 = vector.load %arg2[%c0_15, %c0_16] : memref<512x256xf32, #tpu.memory_space<vmem>>, vector<512x256xf32>
    %cst_17 = arith.constant dense<0.000000e+00> : vector<8x256xf32>
    %39 = tpu.matmul %37, %38, %cst_17 {dimension_numbers = #tpu.dot_dimension_numbers<[1], [0], [0], [1], [0, 0, 1, 1], [], []>} : vector<8x512xf32>, vector<512x256xf32>, vector<8x256xf32> -> vector<8x256xf32>
    %40 = vector.extract_strided_slice %2 {offsets = [0, 0], sizes = [1, 256], strides = [1, 1]} : vector<5x256xf32> to vector<1x256xf32>
    %41 = vector.broadcast %40 : vector<1x256xf32> to vector<8x256xf32>
    %42 = arith.addf %39, %41 : vector<8x256xf32>
    %c0_18 = arith.constant 0 : index
    %c0_19 = arith.constant 0 : index
    %43 = vector.load %arg12[%c0_18, %c0_19] : memref<8x256xf32, #tpu.memory_space<vmem>>, vector<8x256xf32>
    tpu.vector_store %arg12[%c0_18, %c0_19], %42 {strides = array<i32>} : memref<8x256xf32, #tpu.memory_space<vmem>>, vector<8x256xf32>,
    %cst_20 = arith.constant dense<0.000000e+00> : vector<256xf32>
    %44 = vector.multi_reduction <add>, %42, %cst_20 [0] : vector<8x256xf32> to vector<256xf32>
    %45 = vector.shape_cast %44 : vector<256xf32> to vector<1x256xf32>
    %cst_21 = arith.constant 8.000000e+00 : f32
    %46 = vector.broadcast %cst_21 : f32 to vector<1x256xf32>
    %47 = arith.divf %45, %46 : vector<1x256xf32>
    %48 = vector.broadcast %47 : vector<1x256xf32> to vector<8x256xf32>
    %49 = arith.subf %42, %48 : vector<8x256xf32>
    %50 = arith.mulf %49, %49 : vector<8x256xf32>
    %cst_22 = arith.constant dense<0.000000e+00> : vector<256xf32>
    %51 = vector.multi_reduction <add>, %50, %cst_22 [0] : vector<8x256xf32> to vector<256xf32>
    %52 = vector.shape_cast %51 : vector<256xf32> to vector<1x256xf32>
    %cst_23 = arith.constant 8.000000e+00 : f32
    %53 = vector.broadcast %cst_23 : f32 to vector<1x256xf32>
    %54 = arith.divf %52, %53 : vector<1x256xf32>
    %55 = vector.broadcast %47 : vector<1x256xf32> to vector<8x256xf32>
    %56 = arith.subf %42, %55 : vector<8x256xf32>
    %cst_24 = arith.constant 9.99999974E-6 : f32
    %57 = vector.broadcast %cst_24 : f32 to vector<1x256xf32>
    %58 = arith.addf %54, %57 : vector<1x256xf32>
    %59 = math.rsqrt %58 : vector<1x256xf32>
    %60 = vector.broadcast %59 : vector<1x256xf32> to vector<8x256xf32>
    %61 = arith.mulf %56, %60 : vector<8x256xf32>
    %62 = vector.extract_strided_slice %2 {offsets = [1, 0], sizes = [1, 256], strides = [1, 1]} : vector<5x256xf32> to vector<1x256xf32>
    %63 = vector.broadcast %62 : vector<1x256xf32> to vector<8x256xf32>
    %64 = arith.mulf %61, %63 : vector<8x256xf32>
    %65 = vector.extract_strided_slice %2 {offsets = [2, 0], sizes = [1, 256], strides = [1, 1]} : vector<5x256xf32> to vector<1x256xf32>
    %66 = vector.broadcast %65 : vector<1x256xf32> to vector<8x256xf32>
    %67 = arith.addf %64, %66 : vector<8x256xf32>
    %c0_25 = arith.constant 0 : index
    %c0_26 = arith.constant 0 : index
    %68 = vector.load %arg3[%c0_25, %c0_26] : memref<256x512xf32, #tpu.memory_space<vmem>>, vector<256x512xf32>
    %cst_27 = arith.constant dense<0.000000e+00> : vector<8x512xf32>
    %69 = tpu.matmul %67, %68, %cst_27 {dimension_numbers = #tpu.dot_dimension_numbers<[1], [0], [0], [1], [0, 0, 1, 1], [], []>} : vector<8x256xf32>, vector<256x512xf32>, vector<8x512xf32> -> vector<8x512xf32>
    %70 = vector.extract_strided_slice %1 {offsets = [4, 0], sizes = [1, 512], strides = [1, 1]} : vector<8x512xf32> to vector<1x512xf32>
    %71 = vector.broadcast %70 : vector<1x512xf32> to vector<8x512xf32>
    %72 = arith.addf %69, %71 : vector<8x512xf32>
    %73 = vector.extract_strided_slice %1 {offsets = [5, 0], sizes = [1, 512], strides = [1, 1]} : vector<8x512xf32> to vector<1x512xf32>
    %cst_28 = arith.constant 0.000000e+00 : f32
    %74 = vector.broadcast %cst_28 : f32 to vector<8x512xf32>
    %75 = arith.cmpf oge, %72, %74 : vector<8x512xf32>
    %76 = vector.broadcast %73 : vector<1x512xf32> to vector<8x512xf32>
    %77 = arith.mulf %76, %72 : vector<8x512xf32>
    %78 = arith.select %75, %72, %77 : vector<8x512xi1>, vector<8x512xf32>
    %79 = vector.extract_strided_slice %1 {offsets = [6, 0], sizes = [1, 512], strides = [1, 1]} : vector<8x512xf32> to vector<1x512xf32>
    %80 = vector.extract_strided_slice %1 {offsets = [7, 0], sizes = [1, 512], strides = [1, 1]} : vector<8x512xf32> to vector<1x512xf32>
    %cst_29 = arith.constant dense<0.000000e+00> : vector<512xf32>
    %81 = vector.multi_reduction <add>, %78, %cst_29 [0] : vector<8x512xf32> to vector<512xf32>
    %82 = vector.shape_cast %81 : vector<512xf32> to vector<1x512xf32>
    %cst_30 = arith.constant 8.000000e+00 : f32
    %83 = vector.broadcast %cst_30 : f32 to vector<1x512xf32>
    %84 = arith.divf %82, %83 : vector<1x512xf32>
    %85 = vector.broadcast %84 : vector<1x512xf32> to vector<8x512xf32>
    %86 = arith.subf %78, %85 : vector<8x512xf32>
    %87 = arith.mulf %86, %86 : vector<8x512xf32>
    %cst_31 = arith.constant dense<0.000000e+00> : vector<512xf32>
    %88 = vector.multi_reduction <add>, %87, %cst_31 [0] : vector<8x512xf32> to vector<512xf32>
    %89 = vector.shape_cast %88 : vector<512xf32> to vector<1x512xf32>
    %cst_32 = arith.constant 8.000000e+00 : f32
    %90 = vector.broadcast %cst_32 : f32 to vector<1x512xf32>
    %91 = arith.divf %89, %90 : vector<1x512xf32>
    %92 = vector.broadcast %84 : vector<1x512xf32> to vector<8x512xf32>
    %93 = arith.subf %78, %92 : vector<8x512xf32>
    %cst_33 = arith.constant 9.99999974E-6 : f32
    %94 = vector.broadcast %cst_33 : f32 to vector<1x512xf32>
    %95 = arith.addf %91, %94 : vector<1x512xf32>
    %96 = math.rsqrt %95 : vector<1x512xf32>
    %97 = arith.mulf %79, %96 : vector<1x512xf32>
    %98 = vector.broadcast %97 : vector<1x512xf32> to vector<8x512xf32>
    %99 = arith.mulf %93, %98 : vector<8x512xf32>
    %100 = vector.broadcast %80 : vector<1x512xf32> to vector<8x512xf32>
    %101 = arith.addf %99, %100 : vector<8x512xf32>
    %c0_34 = arith.constant 0 : index
    %c0_35 = arith.constant 0 : index
    %102 = vector.load %arg4[%c0_34, %c0_35] : memref<512x64xf32, #tpu.memory_space<vmem>>, vector<512x64xf32>
    %cst_36 = arith.constant dense<0.000000e+00> : vector<8x64xf32>
    %103 = tpu.matmul %101, %102, %cst_36 {dimension_numbers = #tpu.dot_dimension_numbers<[1], [0], [0], [1], [0, 0, 1, 1], [], []>} : vector<8x512xf32>, vector<512x64xf32>, vector<8x64xf32> -> vector<8x64xf32>
    %c0_37 = arith.constant 0 : index
    %c0_38 = arith.constant 0 : index
    %104 = vector.load %arg9[%c0_37, %c0_38] : memref<1x64xf32, #tpu.memory_space<vmem>>, vector<1x64xf32>
    %105 = vector.broadcast %104 : vector<1x64xf32> to vector<8x64xf32>
    %106 = arith.addf %103, %105 : vector<8x64xf32>
    %c0_39 = arith.constant 0 : index
    %c0_40 = arith.constant 0 : index
    %107 = vector.load %arg13[%c0_39, %c0_40] : memref<8x64xf32, #tpu.memory_space<vmem>>, vector<8x64xf32>
    tpu.vector_store %arg13[%c0_39, %c0_40], %106 {strides = array<i32>} : memref<8x64xf32, #tpu.memory_space<vmem>>, vector<8x64xf32>,
    %108 = vector.extract_strided_slice %2 {offsets = [3, 0], sizes = [1, 256], strides = [1, 1]} : vector<5x256xf32> to vector<1x256xf32>
    %109 = vector.broadcast %108 : vector<1x256xf32> to vector<8x256xf32>
    %110 = arith.mulf %61, %109 : vector<8x256xf32>
    %111 = vector.extract_strided_slice %2 {offsets = [4, 0], sizes = [1, 256], strides = [1, 1]} : vector<5x256xf32> to vector<1x256xf32>
    %112 = vector.broadcast %111 : vector<1x256xf32> to vector<8x256xf32>
    %113 = arith.addf %110, %112 : vector<8x256xf32>
    %c0_41 = arith.constant 0 : index
    %c0_42 = arith.constant 0 : index
    %114 = vector.load %arg5[%c0_41, %c0_42] : memref<256x4xf32, #tpu.memory_space<vmem>>, vector<256x4xf32>
    %cst_43 = arith.constant dense<0.000000e+00> : vector<8x4xf32>
    %115 = tpu.matmul %113, %114, %cst_43 {dimension_numbers = #tpu.dot_dimension_numbers<[1], [0], [0], [1], [0, 0, 1, 1], [], []>} : vector<8x256xf32>, vector<256x4xf32>, vector<8x4xf32> -> vector<8x4xf32>
    %c0_44 = arith.constant 0 : index
    %c0_45 = arith.constant 0 : index
    %116 = vector.load %arg6[%c0_44, %c0_45] : memref<256x64xf32, #tpu.memory_space<vmem>>, vector<256x64xf32>
    %cst_46 = arith.constant dense<0.000000e+00> : vector<8x64xf32>
    %117 = tpu.matmul %42, %116, %cst_46 {dimension_numbers = #tpu.dot_dimension_numbers<[1], [0], [0], [1], [0, 0, 1, 1], [], []>} : vector<8x256xf32>, vector<256x64xf32>, vector<8x64xf32> -> vector<8x64xf32>
    %118 = vector.extract_strided_slice %3 {offsets = [0, 0], sizes = [1, 64], strides = [1, 1]} : vector<4x64xf32> to vector<1x64xf32>
    %119 = vector.broadcast %118 : vector<1x64xf32> to vector<8x64xf32>
    %120 = arith.addf %117, %119 : vector<8x64xf32>
    %c0_47 = arith.constant 0 : index
    %c0_48 = arith.constant 0 : index
    %121 = vector.load %arg15[%c0_47, %c0_48] : memref<8x64xf32, #tpu.memory_space<vmem>>, vector<8x64xf32>
    tpu.vector_store %arg15[%c0_47, %c0_48], %120 {strides = array<i32>} : memref<8x64xf32, #tpu.memory_space<vmem>>, vector<8x64xf32>,
    %122 = vector.extract_strided_slice %3 {offsets = [1, 0], sizes = [1, 64], strides = [1, 1]} : vector<4x64xf32> to vector<1x64xf32>
    %123 = vector.extract_strided_slice %3 {offsets = [2, 0], sizes = [1, 64], strides = [1, 1]} : vector<4x64xf32> to vector<1x64xf32>
    %cst_49 = arith.constant dense<0.000000e+00> : vector<64xf32>
    %124 = vector.multi_reduction <add>, %120, %cst_49 [0] : vector<8x64xf32> to vector<64xf32>
    %125 = vector.shape_cast %124 : vector<64xf32> to vector<1x64xf32>
    %cst_50 = arith.constant 8.000000e+00 : f32
    %126 = vector.broadcast %cst_50 : f32 to vector<1x64xf32>
    %127 = arith.divf %125, %126 : vector<1x64xf32>
    %128 = vector.broadcast %127 : vector<1x64xf32> to vector<8x64xf32>
    %129 = arith.subf %120, %128 : vector<8x64xf32>
    %130 = arith.mulf %129, %129 : vector<8x64xf32>
    %cst_51 = arith.constant dense<0.000000e+00> : vector<64xf32>
    %131 = vector.multi_reduction <add>, %130, %cst_51 [0] : vector<8x64xf32> to vector<64xf32>
    %132 = vector.shape_cast %131 : vector<64xf32> to vector<1x64xf32>
    %cst_52 = arith.constant 8.000000e+00 : f32
    %133 = vector.broadcast %cst_52 : f32 to vector<1x64xf32>
    %134 = arith.divf %132, %133 : vector<1x64xf32>
    %135 = vector.broadcast %127 : vector<1x64xf32> to vector<8x64xf32>
    %136 = arith.subf %120, %135 : vector<8x64xf32>
    %cst_53 = arith.constant 9.99999974E-6 : f32
    %137 = vector.broadcast %cst_53 : f32 to vector<1x64xf32>
    %138 = arith.addf %134, %137 : vector<1x64xf32>
    %139 = math.rsqrt %138 : vector<1x64xf32>
    %140 = arith.mulf %122, %139 : vector<1x64xf32>
    %141 = vector.broadcast %140 : vector<1x64xf32> to vector<8x64xf32>
    %142 = arith.mulf %136, %141 : vector<8x64xf32>
    %143 = vector.broadcast %123 : vector<1x64xf32> to vector<8x64xf32>
    %144 = arith.addf %142, %143 : vector<8x64xf32>
    %145 = vector.extract_strided_slice %3 {offsets = [3, 0], sizes = [1, 64], strides = [1, 1]} : vector<4x64xf32> to vector<1x64xf32>
    %146 = vector.broadcast %145 : vector<1x64xf32> to vector<8x64xf32>
    %147 = arith.mulf %144, %146 : vector<8x64xf32>
    %cst_54 = arith.constant dense<0.000000e+00> : vector<8xf32>
    %148 = vector.multi_reduction <add>, %147, %cst_54 [1] : vector<8x64xf32> to vector<8xf32>
    %149 = vector.shape_cast %148 : vector<8xf32> to vector<8x1xf32>
    %150 = tpu.concatenate %115, %149 in 1 : vector<8x4xf32>, vector<8x1xf32> -> vector<8x5xf32>
    %c0_55 = arith.constant 0 : index
    %c0_56 = arith.constant 0 : index
    %151 = vector.load %arg11[%c0_55, %c0_56] : memref<1x5xf32, #tpu.memory_space<vmem>>, vector<1x5xf32>
    %152 = vector.broadcast %151 : vector<1x5xf32> to vector<8x5xf32>
    %153 = arith.addf %150, %152 : vector<8x5xf32>
    %c0_57 = arith.constant 0 : index
    %c0_58 = arith.constant 0 : index
    %154 = vector.load %arg14[%c0_57, %c0_58] : memref<8x5xf32, #tpu.memory_space<vmem>>, vector<8x5xf32>
    tpu.vector_store %arg14[%c0_57, %c0_58], %153 {strides = array<i32>} : memref<8x5xf32, #tpu.memory_space<vmem>>, vector<8x5xf32>,
    return
  }
}

</mosaic_0001>

<bundles_post_ra>
// kernel: tpu_custom_call.1
= control target key start
LH: loop header
LB: loop body
LE: loop exit
PB: predicated region body
PF: predicated region fallthrough
CT: control target
= control target key end

     0   :  { %21 = vsyncpa [#allocation3], 0  ;;  %s3649_s0 = inlined_call_operand.vmem [shape: f32[8,64], index: 0, kind: input, shape index: {}]   ;;  %s3650_s1 = inlined_call_operand.hbm [shape: f32[64,512], index: 1, kind: input, shape index: {}]   ;;  %s3651_s2 = inlined_call_operand.vmem [shape: f32[512,256], index: 2, kind: input, shape index: {}]   ;;  %s3652_s3 = inlined_call_operand.hbm [shape: f32[256,512], index: 3, kind: input, shape index: {}]   ;;  %s3653_s4 = inlined_call_operand.vmem [shape: f32[512,64], index: 4, kind: input, shape index: {}]   ;;  %s3654_s5 = inlined_call_operand.vmem [shape: f32[256,4], index: 5, kind: input, shape index: {}]   ;;  %s3655_s6 = inlined_call_operand.vmem [shape: f32[256,64], index: 6, kind: input, shape index: {}]   ;;  %s3656_s7 = inlined_call_operand.hbm [shape: f32[8,512], index: 7, kind: input, shape index: {}]   ;;  %s3657_s8 = inlined_call_operand.vmem [shape: f32[5,256], index: 8, kind: input, shape index: {}]   ;;  %s3658_s9 = inlined_call_operand.vmem [shape: f32[1,64], index: 9, kind: input, shape index: {}]   ;;  %s3659_s10 = inlined_call_operand.vmem [shape: f32[4,64], index: 10, kind: input, shape index: {}]   ;;  %s3660_s11 = inlined_call_operand.vmem [shape: f32[1,5], index: 11, kind: input, shape index: {}]   ;;  %s3661_s12 = inlined_call_operand.hbm [shape: f32[8,256], index: 12, kind: output, shape index: {0}]   ;;  %s3662_s13 = inlined_call_operand.hbm [shape: f32[8,64], index: 13, kind: output, shape index: {1}]   ;;  %s3663_s14 = inlined_call_operand.hbm [shape: f32[8,5], index: 14, kind: output, shape index: {2}]   ;;  %s3664_s15 = inlined_call_operand.hbm [shape: f32[8,64], index: 15, kind: output, shape index: {3}]  }
   0x1   :  { %22 = vsyncpa [#allocation6], 0 }
   0x2   :  { %23 = vsyncpa [#allocation4], 0 }
   0x3   :  { %24 = vsyncpa [#allocation10], 0 }
   0x4   :  { %25 = vsyncpa [#allocation13], 0  ;;  %s2517_s18 = smov [#allocation5]   ;;  %s2518_s20 = smov [#allocation2]  }
   0x5   :  { %s47_s19 = sshll.u32 %s2517_s18, 4  ;;  %s33_s21 = sshll.u32 %s2518_s20, 4  ;;  %s48_s19 = int_to_ptr.vmem [resolvable:$true] %s47_s19  ;;  %s2607_s21 = int_to_ptr.vmem [resolvable:$true] %s33_s21 }
   0x6   :  { %s2353_s24 = scalar_lea.hbm %s3652_s3, 16384 }
   0x7   :  { %p2354_p0 = scmp.ne.s32.totalorder %s3652_s3, %s2353_s24  ;;  %p2357_p1 = scmp.lt.u32.totalorder %s2353_s24, %s3652_s3 }
   0x9   :  { %p2359_p2 = pnand %p2357_p1, %p2354_p0 }
   0xb   :  { %2362 = shalt.err (!%p2359_p2)
}
   0xc   :  { %s2363_s29 = scalar_lea.vmem %s48_s19, 16384  ;;  %p2368_p4 = scmp.lt.s32.totalorder %s48_s19, %s48_s19 }
   0xd   :  { %p2364_p3 = scmp.ne.s32.totalorder %s48_s19, %s2363_s29  ;;  %p2369_p5 = scmp.lt.s32.totalorder %s2363_s29, %s2363_s29 }
   0xf   :  { %p2370_p6 = por %p2369_p5, %p2368_p4 }
  0x11   :  { %p2371_p7 = pnand %p2370_p6, %p2364_p3 }
  0x13   :  { %2374 = shalt.err (!%p2371_p7)
}
  0x14   :  { %s2519_s30 = smov 512   ;;  %s2520_s16 = smov 32  }
  0x15   :  { %53 = dma.hbm_to_vmem [thread:$0]  %s3652_s3, 16384, %s48_s19, [#allocation6], %s2519_s30, %s2519_s30, %s2520_s16  }
  0x16   :  { %s2375_s23 = scalar_lea.hbm %s3650_s1, 4096 }
  0x17   :  { %p2376_p8 = scmp.ne.s32.totalorder %s3650_s1, %s2375_s23  ;;  %p2379_p9 = scmp.lt.u32.totalorder %s2375_s23, %s3650_s1 }
  0x19   :  { %p2381_p10 = pnand %p2379_p9, %p2376_p8 }
  0x1b   :  { %2384 = shalt.err (!%p2381_p10)
}
  0x1c   :  { %s2385_s28 = scalar_lea.vmem %s2607_s21, 4096  ;;  %p2390_p12 = scmp.lt.s32.totalorder %s2607_s21, %s2607_s21 }
  0x1d   :  { %p2386_p11 = scmp.ne.s32.totalorder %s2607_s21, %s2385_s28  ;;  %p2391_p13 = scmp.lt.s32.totalorder %s2385_s28, %s2385_s28 }
  0x1f   :  { %p2392_p0 = por %p2391_p13, %p2390_p12 }
  0x21   :  { %p2393_p1 = pnand %p2392_p0, %p2386_p11 }
  0x23   :  { %2396 = shalt.err (!%p2393_p1)
}
  0x24   :  { %39 = dma.hbm_to_vmem [thread:$0]  %s3650_s1, 4096, %s2607_s21, [#allocation3], %s2519_s30, %s2519_s30, %s2520_s16  }
  0x25   :  { %s2521_s29 = smov [#allocation7]   ;;  %s2397_s22 = scalar_lea.hbm %s3656_s7, 512 }
  0x26   :  { %s66_s17 = sshll.u32 %s2521_s29, 4  ;;  %p2398_p2 = scmp.ne.s32.totalorder %s3656_s7, %s2397_s22  ;;  %s67_s17 = int_to_ptr.vmem [resolvable:$true] %s66_s17 }
  0x27   :  { %p2401_p3 = scmp.lt.u32.totalorder %s2397_s22, %s3656_s7 }
  0x29   :  { %p2403_p4 = pnand %p2401_p3, %p2398_p2 }
  0x2b   :  { %2406 = shalt.err (!%p2403_p4)
}
  0x2c   :  { %s2407_s27 = scalar_lea.vmem %s67_s17, 512  ;;  %p2412_p6 = scmp.lt.s32.totalorder %s67_s17, %s67_s17 }
  0x2d   :  { %p2408_p5 = scmp.ne.s32.totalorder %s67_s17, %s2407_s27  ;;  %p2413_p7 = scmp.lt.s32.totalorder %s2407_s27, %s2407_s27 }
  0x2f   :  { %p2414_p8 = por %p2413_p7, %p2412_p6 }
  0x31   :  { %p2415_p9 = pnand %p2414_p8, %p2408_p5 }
  0x33   :  { %2418 = shalt.err (!%p2415_p9)
}
  0x34   :  { %69 = dma.hbm_to_vmem [thread:$0]  %s3656_s7, 512, %s67_s17, [#allocation6]  }
  0x35   :  { %2507 = dma.done.wait [#allocation3], 4096  }
  0x36   :  { %2508 = vsyncadd [#allocation3], 4294963200 }
  0x37   :  { %2509 = dma.done.wait [#allocation6], 16896  }
  0x38   :  { %2510 = vsyncadd [#allocation6], 4294950400  ;;  %v2522_v0 = vmov 0.0   ;;  %v96_v1 = vld [vmem:[#allocation2 + $0x8] sm:$0xff]  ;;  %v95_v3 = vld [vmem:[#allocation2] sm:$0xff]  ;;  %vm143_vm0 = vcmask 523264  }
  0x39   :  { %211 = vmatprep.mubr.f32.mxu0 %v2522_v0  ;;  %282 = vmatprep.mubr.f32.mxu1 %v2522_v0  ;;  %v100_v2 = vld [vmem:[#allocation2 + $0x28] sm:$0xff]  ;;  %v99_v5 = vld [vmem:[#allocation2 + $0x20] sm:$0xff]  ;;  %v98_v19 = vld [vmem:[#allocation2 + $0x18] sm:$0xff]  ;;  %s2524_s24 = smov [#allocation8]  }
  0x3a   :  { %v1895_v4 = vpack.c.bf16 %v100_v2, %v96_v1  ;;  %v104_v6 = vld [vmem:[#allocation2 + $0x48] sm:$0xff]  ;;  %v1897_v8 = vpack.c.bf16 %v99_v5, %v95_v3  ;;  %v103_v10 = vld [vmem:[#allocation2 + $0x40] sm:$0xff]  ;;  %v102_v20 = vld [vmem:[#allocation2 + $0x38] sm:$0xff]  ;;  %s1700_s25 = sshll.u32 %s2524_s24, 4  ;;  %s1701_s25 = int_to_ptr.vmem [resolvable:$true] %s1700_s25 }
  0x3b   :  { %v108_v7 = vld [vmem:[#allocation2 + $0x68] sm:$0xff]  ;;  %v107_v11 = vld [vmem:[#allocation2 + $0x60] sm:$0xff]  ;;  %v1911_v22 = vpack.c.bf16 %v102_v20, %v98_v19  ;;  %v97_v23 = vld [vmem:[#allocation2 + $0x10] sm:$0xff] }
  0x3c   :  { %v1899_v9 = vpack.c.bf16 %v108_v7, %v104_v6  ;;  %v112_v12 = vld [vmem:[#allocation2 + $0x88] sm:$0xff]  ;;  %1896 = vmatprep.subr.bf16.mxu0 %v1895_v4  ;;  %v1901_v14 = vpack.c.bf16 %v107_v11, %v103_v10  ;;  %v111_v15 = vld [vmem:[#allocation2 + $0x80] sm:$0xff]  ;;  %v101_v24 = vld [vmem:[#allocation2 + $0x30] sm:$0xff] }
  0x3d   :  { %v116_v13 = vld [vmem:[#allocation2 + $0xa8] sm:$0xff]  ;;  %1898 = vmatpush1.bf16.msra.mxu0 %v1897_v8  ;;  %v115_v16 = vld [vmem:[#allocation2 + $0xa0] sm:$0xff]  ;;  %v1913_v25 = vpack.c.bf16 %v101_v24, %v97_v23  ;;  %v106_v26 = vld [vmem:[#allocation2 + $0x58] sm:$0xff]  ;;  %1912 = vmatprep.subr.bf16.mxu1 %v1911_v22 }
  0x3e   :  { %1900 = vmatprep.subr.bf16.mxu0 %v1899_v9  ;;  %v1903_v17 = vpack.c.bf16 %v116_v13, %v112_v12  ;;  %v120_v18 = vld [vmem:[#allocation2 + $0xc8] sm:$0xff]  ;;  %v110_v27 = vld [vmem:[#allocation2 + $0x78] sm:$0xff]  ;;  %v105_v28 = vld [vmem:[#allocation2 + $0x50] sm:$0xff]  ;;  %v1905_v29 = vpack.c.bf16 %v115_v16, %v111_v15 }
  0x3f   :  { %v124_v21 = vld [vmem:[#allocation2 + $0xe8] sm:$0xff]  ;;  %v1915_v30 = vpack.c.bf16 %v110_v27, %v106_v26  ;;  %v109_v31 = vld [vmem:[#allocation2 + $0x70] sm:$0xff]  ;;  %v114_v32 = vld [vmem:[#allocation2 + $0x98] sm:$0xff]  ;;  %1914 = vmatpush1.bf16.msra.mxu1 %v1913_v25 }
  0x40   :  { %v118_v33 = vld [vmem:[#allocation2 + $0xb8] sm:$0xff]  ;;  %v1907_v34 = vpack.c.bf16 %v124_v21, %v120_v18  ;;  %v119_v35 = vld [vmem:[#allocation2 + $0xc0] sm:$0xff]  ;;  %v1917_v37 = vpack.c.bf16 %v109_v31, %v105_v28  ;;  %v113_v39 = vld [vmem:[#allocation2 + $0x90] sm:$0xff] }
  0x41   :  { %1902 = vmatpush1.bf16.msra.mxu0 %v1901_v14  ;;  %v123_v36 = vld [vmem:[#allocation2 + $0xe0] sm:$0xff]  ;;  %1916 = vmatprep.subr.bf16.mxu1 %v1915_v30  ;;  %v1919_v38 = vpack.c.bf16 %v118_v33, %v114_v32  ;;  %v117_v40 = vld [vmem:[#allocation2 + $0xb0] sm:$0xff]  ;;  %v122_v41 = vld [vmem:[#allocation2 + $0xd8] sm:$0xff] }
  0x42   :  { %1904 = vmatprep.subr.bf16.mxu0 %v1903_v17  ;;  %v126_v42 = vld [vmem:[#allocation2 + $0xf8] sm:$0xff]  ;;  %v435_v43 = vld [vmem:[%s3651_s2 + $0x8] sm:$0xff]  ;;  %v1909_v45 = vpack.c.bf16 %v123_v36, %v119_v35  ;;  %v1921_v46 = vpack.c.bf16 %v117_v40, %v113_v39  ;;  %v434_v48 = vld [vmem:[%s3651_s2] sm:$0xff] }
  0x43   :  { %v437_v44 = vld [vmem:[%s3651_s2 + $0x18] sm:$0xff]  ;;  %1918 = vmatpush1.bf16.msra.mxu1 %v1917_v37  ;;  %v436_v49 = vld [vmem:[%s3651_s2 + $0x10] sm:$0xff]  ;;  %v1923_v50 = vpack.c.bf16 %v126_v42, %v122_v41  ;;  %v87_v53 = vld [vmem:[%s3649_s0] sm:$0xff] }
  0x44   :  { %v1927_v47 = vpack.c.bf16 %v437_v44, %v435_v43  ;;  %1920 = vmatprep.subr.bf16.mxu1 %v1919_v38  ;;  %v121_v51 = vld [vmem:[#allocation2 + $0xd0] sm:$0xff]  ;;  %v1929_v54 = vpack.c.bf16 %v436_v49, %v434_v48  ;;  %v439_v56 = vld [vmem:[%s3651_s2 + $0x28] sm:$0xff]  ;;  %v441_v57 = vld [vmem:[%s3651_s2 + $0x38] sm:$0xff] }
  0x45   :  { %1906 = vmatpush1.bf16.msra.mxu0 %v1905_v29  ;;  %v125_v52 = vld [vmem:[#allocation2 + $0xf0] sm:$0xff]  ;;  %v1931_v58 = vpack.c.bf16 %v441_v57, %v439_v56  ;;  %v438_v59 = vld [vmem:[%s3651_s2 + $0x20] sm:$0xff]  ;;  %v443_v62 = vld [vmem:[%s3651_s2 + $0x48] sm:$0xff] }
  0x46   :  { %1908 = vmatprep.subr.bf16.mxu0 %v1907_v34  ;;  %v1925_v55 = vpack.c.bf16 %v125_v52, %v121_v51  ;;  %v440_v60 = vld [vmem:[%s3651_s2 + $0x30] sm:$0xff]  ;;  %v445_v63 = vld [vmem:[%s3651_s2 + $0x58] sm:$0xff]  ;;  %v442_v1 = vld [vmem:[%s3651_s2 + $0x40] sm:$0xff] }
  0x47   :  { %1922 = vmatpush1.bf16.msra.mxu1 %v1921_v46  ;;  %v1933_v61 = vpack.c.bf16 %v440_v60, %v438_v59  ;;  %v1935_v0 = vpack.c.bf16 %v445_v63, %v443_v62  ;;  %v444_v2 = vld [vmem:[%s3651_s2 + $0x50] sm:$0xff]  ;;  %v447_v4 = vld [vmem:[%s3651_s2 + $0x68] sm:$0xff]  ;;  %v449_v5 = vld [vmem:[%s3651_s2 + $0x78] sm:$0xff] }
  0x48   :  { %1924 = vmatprep.subr.bf16.mxu1 %v1923_v50  ;;  %v1937_v3 = vpack.c.bf16 %v444_v2, %v442_v1  ;;  %v1939_v6 = vpack.c.bf16 %v449_v5, %v447_v4  ;;  %v446_v7 = vld [vmem:[%s3651_s2 + $0x60] sm:$0xff]  ;;  %v448_v8 = vld [vmem:[%s3651_s2 + $0x70] sm:$0xff]  ;;  %v451_v10 = vld [vmem:[%s3651_s2 + $0x88] sm:$0xff] }
  0x49   :  { %1910 = vmatpush1.bf16.msra.mxu0 %v1909_v45  ;;  %v1941_v9 = vpack.c.bf16 %v448_v8, %v446_v7  ;;  %v453_v11 = vld [vmem:[%s3651_s2 + $0x98] sm:$0xff]  ;;  %v450_v13 = vld [vmem:[%s3651_s2 + $0x80] sm:$0xff]  ;;  %v452_v14 = vld [vmem:[%s3651_s2 + $0x90] sm:$0xff] }
  0x4a   :  { %1928 = vmatprep.subr.bf16.mxu0 %v1927_v47  ;;  %v1943_v12 = vpack.c.bf16 %v453_v11, %v451_v10  ;;  %v1945_v15 = vpack.c.bf16 %v452_v14, %v450_v13  ;;  %v455_v16 = vld [vmem:[%s3651_s2 + $0xa8] sm:$0xff]  ;;  %v457_v17 = vld [vmem:[%s3651_s2 + $0xb8] sm:$0xff]  ;;  %v454_v19 = vld [vmem:[%s3651_s2 + $0xa0] sm:$0xff] }
  0x4b   :  { %1926 = vmatpush1.bf16.msra.mxu1 %v1925_v55  ;;  %v1947_v18 = vpack.c.bf16 %v457_v17, %v455_v16  ;;  %v456_v20 = vld [vmem:[%s3651_s2 + $0xb0] sm:$0xff]  ;;  %v459_v22 = vld [vmem:[%s3651_s2 + $0xc8] sm:$0xff]  ;;  %v461_v23 = vld [vmem:[%s3651_s2 + $0xd8] sm:$0xff] }
  0x4c   :  { %1751 = vmatmul.mubr.msk.f32.vlgmr.msra.gmra.mrb[0].mxu0 %vm143_vm0, %v87_v53  ;;  %v1949_v21 = vpack.c.bf16 %v456_v20, %v454_v19  ;;  %v1951_v24 = vpack.c.bf16 %v461_v23, %v459_v22  ;;  %v458_v25 = vld [vmem:[%s3651_s2 + $0xc0] sm:$0xff]  ;;  %v460_v26 = vld [vmem:[%s3651_s2 + $0xd0] sm:$0xff]  ;;  %v463_v28 = vld [vmem:[%s3651_s2 + $0xe8] sm:$0xff] }
  0x4d   :  { %1930 = vmatpush1.bf16.msra.mxu0 %v1929_v54  ;;  %v1953_v27 = vpack.c.bf16 %v460_v26, %v458_v25  ;;  %v465_v29 = vld [vmem:[%s3651_s2 + $0xf8] sm:$0xff]  ;;  %v462_v31 = vld [vmem:[%s3651_s2 + $0xe0] sm:$0xff]  ;;  %v464_v32 = vld [vmem:[%s3651_s2 + $0xf0] sm:$0xff] }
  0x4e   :  { %1752 = vmatmul.mubr.msk.f32.vlgmr.msra.gmra.mrb[0].mxu1 %vm143_vm0, %v87_v53  ;;  %1932 = vmatprep.subr.bf16.mxu0 %v1931_v58  ;;  %v1955_v30 = vpack.c.bf16 %v465_v29, %v463_v28  ;;  %v1957_v33 = vpack.c.bf16 %v464_v32, %v462_v31  ;;  %v467_v34 = vld [vmem:[%s3651_s2 + $0x108] sm:$0xff]  ;;  %v469_v35 = vld [vmem:[%s3651_s2 + $0x118] sm:$0xff]  ;;  %v466_v37 = vld [vmem:[%s3651_s2 + $0x100] sm:$0xff] }
  0x4f   :  { %v1959_v36 = vpack.c.bf16 %v469_v35, %v467_v34  ;;  %v468_v38 = vld [vmem:[%s3651_s2 + $0x110] sm:$0xff]  ;;  %v471_v40 = vld [vmem:[%s3651_s2 + $0x128] sm:$0xff]  ;;  %v473_v41 = vld [vmem:[%s3651_s2 + $0x138] sm:$0xff] }
  0x50   :  { %v1961_v39 = vpack.c.bf16 %v468_v38, %v466_v37  ;;  %v1963_v42 = vpack.c.bf16 %v473_v41, %v471_v40  ;;  %v470_v43 = vld [vmem:[%s3651_s2 + $0x120] sm:$0xff]  ;;  %v472_v44 = vld [vmem:[%s3651_s2 + $0x130] sm:$0xff]  ;;  %v475_v46 = vld [vmem:[%s3651_s2 + $0x148] sm:$0xff] }
  0x51   :  { %1934 = vmatpush1.bf16.msra.mxu0 %v1933_v61  ;;  %v1965_v45 = vpack.c.bf16 %v472_v44, %v470_v43  ;;  %v477_v47 = vld [vmem:[%s3651_s2 + $0x158] sm:$0xff]  ;;  %v474_v49 = vld [vmem:[%s3651_s2 + $0x140] sm:$0xff]  ;;  %v476_v50 = vld [vmem:[%s3651_s2 + $0x150] sm:$0xff] }
  0x52   :  { %1936 = vmatprep.subr.bf16.mxu0 %v1935_v0  ;;  %v1967_v48 = vpack.c.bf16 %v477_v47, %v475_v46  ;;  %v1969_v51 = vpack.c.bf16 %v476_v50, %v474_v49  ;;  %v479_v52 = vld [vmem:[%s3651_s2 + $0x168] sm:$0xff]  ;;  %v481_v53 = vld [vmem:[%s3651_s2 + $0x178] sm:$0xff]  ;;  %v478_v55 = vld [vmem:[%s3651_s2 + $0x160] sm:$0xff] }
  0x53   :  { %v1971_v54 = vpack.c.bf16 %v481_v53, %v479_v52  ;;  %v480_v56 = vld [vmem:[%s3651_s2 + $0x170] sm:$0xff]  ;;  %v483_v58 = vld [vmem:[%s3651_s2 + $0x188] sm:$0xff]  ;;  %v485_v59 = vld [vmem:[%s3651_s2 + $0x198] sm:$0xff] }
  0x54   :  { %v1973_v57 = vpack.c.bf16 %v480_v56, %v478_v55  ;;  %v1975_v60 = vpack.c.bf16 %v485_v59, %v483_v58  ;;  %v482_v61 = vld [vmem:[%s3651_s2 + $0x180] sm:$0xff]  ;;  %v484_v62 = vld [vmem:[%s3651_s2 + $0x190] sm:$0xff]  ;;  %v487_v0 = vld [vmem:[%s3651_s2 + $0x1a8] sm:$0xff] }
  0x55   :  { %1938 = vmatpush1.bf16.msra.mxu0 %v1937_v3  ;;  %v1977_v63 = vpack.c.bf16 %v484_v62, %v482_v61  ;;  %v489_v1 = vld [vmem:[%s3651_s2 + $0x1b8] sm:$0xff]  ;;  %v486_v3 = vld [vmem:[%s3651_s2 + $0x1a0] sm:$0xff]  ;;  %v488_v4 = vld [vmem:[%s3651_s2 + $0x1b0] sm:$0xff] }
  0x56   :  { %1940 = vmatprep.subr.bf16.mxu0 %v1939_v6  ;;  %v1979_v2 = vpack.c.bf16 %v489_v1, %v487_v0  ;;  %v1981_v5 = vpack.c.bf16 %v488_v4, %v486_v3  ;;  %v491_v6 = vld [vmem:[%s3651_s2 + $0x1c8] sm:$0xff]  ;;  %v493_v7 = vld [vmem:[%s3651_s2 + $0x1d8] sm:$0xff]  ;;  %v492_v10 = vld [vmem:[%s3651_s2 + $0x1d0] sm:$0xff] }
  0x57   :  { %v1983_v8 = vpack.c.bf16 %v493_v7, %v491_v6  ;;  %v497_v13 = vld [vmem:[%s3651_s2 + $0x1f8] sm:$0xff]  ;;  %v496_v16 = vld [vmem:[%s3651_s2 + $0x1f0] sm:$0xff]  ;;  %v2863_v26 = vld [vmem:[#allocation7 + $0x8] sm:$0xff] }
  0x58   :  { %v501_v19 = vld [vmem:[%s3651_s2 + $0x218] sm:$0xff]  ;;  %v773_v28 = vld [vmem:[#allocation5 + $0x8] sm:$0xff]  ;;  %v784_v40 = vld [vmem:[#allocation5 + $0x60] sm:$0xff] }
  0x59   :  { %1942 = vmatpush1.bf16.msra.mxu0 %v1941_v9  ;;  %v490_v9 = vld [vmem:[%s3651_s2 + $0x1c0] sm:$0xff]  ;;  %v777_v29 = vld [vmem:[#allocation5 + $0x28] sm:$0xff]  ;;  %v2873_v44 = vld [vmem:[#allocation7 + $0x18] sm:$0xff] }
  0x5a   :  { %1944 = vmatprep.subr.bf16.mxu0 %v1943_v12  ;;  %v1985_v11 = vpack.c.bf16 %v492_v10, %v490_v9  ;;  %v495_v12 = vld [vmem:[%s3651_s2 + $0x1e8] sm:$0xff]  ;;  %v2055_v32 = vpack.c.bf16 %v777_v29, %v773_v28 }
  0x5b   :  { %v1987_v14 = vpack.c.bf16 %v497_v13, %v495_v12  ;;  %v781_v34 = vld [vmem:[#allocation5 + $0x48] sm:$0xff] }
  0x5c   :  { %v785_v35 = vld [vmem:[#allocation5 + $0x68] sm:$0xff]  ;;  %2056 = vmatprep.subr.bf16.mxu1 %v2055_v32 }
  0x5d   :  { %1946 = vmatpush1.bf16.msra.mxu0 %v1945_v15  ;;  %v494_v15 = vld [vmem:[%s3651_s2 + $0x1e0] sm:$0xff]  ;;  %v2059_v38 = vpack.c.bf16 %v785_v35, %v781_v34  ;;  %v789_v41 = vld [vmem:[#allocation5 + $0x88] sm:$0xff] }
  0x5e   :  { %1948 = vmatprep.subr.bf16.mxu0 %v1947_v18  ;;  %v1989_v17 = vpack.c.bf16 %v496_v16, %v494_v15  ;;  %v499_v18 = vld [vmem:[%s3651_s2 + $0x208] sm:$0xff] }
  0x5f   :  { %v1991_v20 = vpack.c.bf16 %v501_v19, %v499_v18 }
  0x61   :  { %1950 = vmatpush1.bf16.msra.mxu0 %v1949_v21  ;;  %v127_v21 = vlaneseq }
  0x62   :  { %1952 = vmatprep.subr.bf16.mxu0 %v1951_v24  ;;  %v2858_v24 = vld [vmem:[#allocation7] sm:$0xff] }
  0x63   :  { %v2853_v22 = vshrl.u32 %v127_v21, 7 }
  0x65   :  { %1954 = vmatpush1.bf16.msra.mxu0 %v1953_v27  ;;  %v2856_v23 = vsub.s32 0, %v2853_v22  ;;  %v2861_v25 = vsub.s32 1, %v2853_v22 }
  0x66   :  { %1956 = vmatprep.subr.bf16.mxu0 %v1955_v30  ;;  %v772_v30 = vld [vmem:[#allocation5] sm:$0xff] }
  0x67   :  { %v130_v27 = vrot.slane %v2858_v24, %v2856_v23  ;;  %v134_v31 = vrot.slane %v2863_v26, %v2856_v23  ;;  %v300_v43 = vrot.slane %v2863_v26, %v2861_v25  ;;  %v142_v52 = vrot.slane %v2873_v44, %v2856_v23 }
  0x68   :  { %v308_v56 = vrot.slane %v2873_v44, %v2861_v25 }
  0x69   :  { %1958 = vmatpush1.bf16.msra.mxu0 %v1957_v33  ;;  %v776_v33 = vld [vmem:[#allocation5 + $0x20] sm:$0xff] }
  0x6a   :  { %1960 = vmatprep.subr.bf16.mxu0 %v1959_v36  ;;  %v296_v36 = vrot.slane %v2858_v24, %v2861_v25  ;;  %v2057_v37 = vpack.c.bf16 %v776_v33, %v772_v30 }
  0x6c   :  { %2058 = vmatpush1.bf16.msra.mxu1 %v2057_v37 }
  0x6d   :  { %1962 = vmatpush1.bf16.msra.mxu0 %v1961_v39  ;;  %v780_v39 = vld [vmem:[#allocation5 + $0x40] sm:$0xff]  ;;  %2060 = vmatprep.subr.bf16.mxu1 %v2059_v38 }
  0x6e   :  { %1964 = vmatprep.subr.bf16.mxu0 %v1963_v42 }
  0x71   :  { %1966 = vmatpush1.bf16.msra.mxu0 %v1965_v45  ;;  %v793_v45 = vld [vmem:[#allocation5 + $0xa8] sm:$0xff] }
  0x72   :  { %1968 = vmatprep.subr.bf16.mxu0 %v1967_v48  ;;  %v2061_v48 = vpack.c.bf16 %v784_v40, %v780_v39  ;;  %v2063_v50 = vpack.c.bf16 %v793_v45, %v789_v41 }
  0x74   :  { %2062 = vmatpush1.bf16.msra.mxu1 %v2061_v48 }
  0x75   :  { %1970 = vmatpush1.bf16.msra.mxu0 %v1969_v51  ;;  %2064 = vmatprep.subr.bf16.mxu1 %v2063_v50 }
  0x76   :  { %1972 = vmatprep.subr.bf16.mxu0 %v1971_v54 }
  0x79   :  { %1974 = vmatpush1.bf16.msra.mxu0 %v1973_v57 }
  0x7a   :  { %1976 = vmatprep.subr.bf16.mxu0 %v1975_v60 }
  0x7d   :  { %1978 = vmatpush1.bf16.msra.mxu0 %v1977_v63 }
  0x7e   :  { %1980 = vmatprep.subr.bf16.mxu0 %v1979_v2 }
  0x81   :  { %1982 = vmatpush1.bf16.msra.mxu0 %v1981_v5  ;;  %v2879_v5 = vld [vmem:[#allocation7 + $0x10] sm:$0xff] }
  0x82   :  { %1984 = vmatprep.subr.bf16.mxu0 %v1983_v8  ;;  %v304_v19 = vrot.slane %v2879_v5, %v2861_v25 }
  0x85   :  { %1986 = vmatpush1.bf16.msra.mxu0 %v1985_v11  ;;  %v138_v11 = vrot.slane %v2879_v5, %v2856_v23 }
  0x86   :  { %1988 = vmatprep.subr.bf16.mxu0 %v1987_v14 }
  0x89   :  { %1990 = vmatpush1.bf16.msra.mxu0 %v1989_v17 }
  0x8a   :  { %1992 = vmatprep.subr.bf16.mxu0 %v1991_v20 }
 0x11f   :  { %v213_v42 = vpop.f32.mrb[0].mxu0 }
 0x120   :  { %v214_v46 = vadd.f32 %v213_v42, %v130_v27  ;;  %v215_v47 = vpop.f32.mrb[1].mxu0 }
 0x121   :  { %v216_v49 = vadd.f32 %v215_v47, %v134_v31  ;;  %v284_v55 = vpop.f32.mrb[0].mxu1 }
 0x122   :  { %vm289_vm1 = vcmp.ge.f32.partialorder %v214_v46, 0.0  ;;  %v309_v51 = vmul.f32 %v296_v36, %v214_v46  ;;  %v286_v59 = vpop.f32.mrb[1].mxu1  ;;  %v285_v18 = vadd.f32 %v284_v55, %v138_v11 }
 0x123   :  { %vm290_vm2 = vcmp.ge.f32.partialorder %v216_v49, 0.0  ;;  %v310_v53 = vmul.f32 %v300_v43, %v216_v49  ;;  %v287_v61 = vadd.f32 %v286_v59, %v142_v52 }
 0x124   :  { %v313_v54 = vsel %vm289_vm1, %v214_v46, %v309_v51  ;;  %v311_v31 = vmul.f32 %v304_v19, %v285_v18  ;;  %vm291_vm4 = vcmp.ge.f32.partialorder %v285_v18, 0.0 }
 0x125   :  { %v317_v57 = vrot.slane %v313_v54, 4  ;;  %v314_v58 = vsel %vm290_vm2, %v216_v49, %v310_v53  ;;  %vm292_vm3 = vcmp.ge.f32.partialorder %v287_v61, 0.0  ;;  %v312_v0 = vmul.f32 %v308_v56, %v287_v61 }
 0x126   :  { %v323_v60 = vrot.slane %v314_v58, 4  ;;  %v315_v38 = vsel %vm291_vm4, %v285_v18, %v311_v31 }
 0x127   :  { %v318_v62 = vadd.f32 %v317_v57, %v313_v54  ;;  %v316_v3 = vsel %vm292_vm3, %v287_v61, %v312_v0  ;;  %v329_v43 = vrot.slane %v315_v38, 4 }
 0x128   :  { %v324_v63 = vadd.f32 %v323_v60, %v314_v58  ;;  %v335_v6 = vrot.slane %v316_v3, 4 }
 0x129   :  { %v319_v1 = vrot.slane %v318_v62, 2  ;;  %v330_v51 = vadd.f32 %v329_v43, %v315_v38 }
 0x12a   :  { %v325_v2 = vrot.slane %v324_v63, 2  ;;  %v336_v9 = vadd.f32 %v335_v6, %v316_v3  ;;  %v2893_v6 = vsub.s32 3, %v2853_v22 }
 0x12b   :  { %v320_v4 = vadd.f32 %v319_v1, %v318_v62 }
 0x12c   :  { %v326_v7 = vadd.f32 %v325_v2, %v324_v63  ;;  %v337_v13 = vrot.slane %v336_v9, 2  ;;  %v2890_v2 = vsub.s32 2, %v2853_v22 }
 0x12d   :  { %v321_v8 = vrot.slane %v320_v4, 1 }
 0x12e   :  { %v327_v10 = vrot.slane %v326_v7, 1  ;;  %v338_v16 = vadd.f32 %v337_v13, %v336_v9  ;;  %v421_v13 = vrot.slane %v2863_v26, %v2893_v6 }
 0x12f   :  { %v322_v12 = vadd.f32 %v321_v8, %v320_v4 }
 0x130   :  { %v328_v14 = vadd.f32 %v327_v10, %v326_v7  ;;  %v339_v21 = vrot.slane %v338_v16, 1 }
 0x131   :  { %v342_v15 = vmul.f32 0.125, %v322_v12 }
 0x132   :  { %v343_v17 = vmul.f32 0.125, %v328_v14  ;;  %v340_v29 = vadd.f32 %v339_v21, %v338_v16  ;;  %v498_v16 = vld [vmem:[%s3651_s2 + $0x200] sm:$0xff]  ;;  %v503_v21 = vld [vmem:[%s3651_s2 + $0x228] sm:$0xff] }
 0x133   :  { %v346_v20 = vsub.f32 %v313_v54, %v342_v15  ;;  %v417_v15 = vrot.slane %v2858_v24, %v2893_v6 }
 0x134   :  { %v347_v27 = vsub.f32 %v314_v58, %v343_v17  ;;  %v345_v33 = vmul.f32 0.125, %v340_v29  ;;  %v331_v58 = vrot.slane %v330_v51, 2  ;;  %v500_v17 = vld [vmem:[%s3651_s2 + $0x210] sm:$0xff] }
 0x135   :  { %v350_v28 = vmul.f32 %v346_v20, %v346_v20  ;;  %v1993_v29 = vpack.c.bf16 %v500_v17, %v498_v16  ;;  %v526_v16 = vld [vmem:[%s3651_s2 + $0x2e0] sm:$0xff]  ;;  %v528_v17 = vld [vmem:[%s3651_s2 + $0x2f0] sm:$0xff] }
 0x136   :  { %v351_v30 = vmul.f32 %v347_v27, %v347_v27  ;;  %v2885_v36 = vsub.f32 %v316_v3, %v345_v33  ;;  %v332_v62 = vadd.f32 %v331_v58, %v330_v51  ;;  %v515_v51 = vld [vmem:[%s3651_s2 + $0x288] sm:$0xff] }
 0x137   :  { %v354_v32 = vrot.slane %v350_v28, 4  ;;  %v519_v58 = vld [vmem:[%s3651_s2 + $0x2a8] sm:$0xff] }
 0x138   :  { %v360_v34 = vrot.slane %v351_v30, 4  ;;  %v353_v40 = vmul.f32 %v2885_v36, %v2885_v36  ;;  %v333_v1 = vrot.slane %v332_v62, 1 }
 0x139   :  { %v355_v35 = vadd.f32 %v354_v32, %v350_v28  ;;  %v504_v32 = vld [vmem:[%s3651_s2 + $0x230] sm:$0xff] }
 0x13a   :  { %v361_v37 = vadd.f32 %v360_v34, %v351_v30  ;;  %v372_v45 = vrot.slane %v353_v40, 4  ;;  %v334_v4 = vadd.f32 %v333_v1, %v332_v62  ;;  %v429_v34 = vrot.slane %v2873_v44, %v2893_v6  ;;  %v523_v1 = vld [vmem:[%s3651_s2 + $0x2c8] sm:$0xff] }
 0x13b   :  { %v356_v39 = vrot.slane %v355_v35, 2 }
 0x13c   :  { %v362_v41 = vrot.slane %v361_v37, 2  ;;  %v373_v48 = vadd.f32 %v372_v45, %v353_v40  ;;  %v344_v11 = vmul.f32 0.125, %v334_v4  ;;  %v513_v45 = vld [vmem:[%s3651_s2 + $0x278] sm:$0xff] }
 0x13d   :  { %v357_v42 = vadd.f32 %v356_v39, %v355_v35  ;;  %v507_v35 = vld [vmem:[%s3651_s2 + $0x248] sm:$0xff] }
 0x13e   :  { %v363_v46 = vadd.f32 %v362_v41, %v361_v37  ;;  %v374_v52 = vrot.slane %v373_v48, 2  ;;  %v509_v37 = vld [vmem:[%s3651_s2 + $0x258] sm:$0xff] }
 0x13f   :  { %v358_v47 = vrot.slane %v357_v42, 1  ;;  %v1999_v41 = vpack.c.bf16 %v509_v37, %v507_v35  ;;  %v536_v35 = vld [vmem:[%s3651_s2 + $0x330] sm:$0xff]  ;;  %v539_v37 = vld [vmem:[%s3651_s2 + $0x348] sm:$0xff] }
 0x140   :  { %v364_v49 = vrot.slane %v363_v46, 1  ;;  %v375_v55 = vadd.f32 %v374_v52, %v373_v48  ;;  %v517_v52 = vld [vmem:[%s3651_s2 + $0x298] sm:$0xff] }
 0x141   :  { %v359_v50 = vadd.f32 %v358_v47, %v357_v42  ;;  %v508_v42 = vld [vmem:[%s3651_s2 + $0x250] sm:$0xff] }
 0x142   :  { %v365_v53 = vadd.f32 %v364_v49, %v363_v46  ;;  %v376_v59 = vrot.slane %v375_v55, 1  ;;  %v510_v49 = vld [vmem:[%s3651_s2 + $0x260] sm:$0xff] }
 0x143   :  { %v378_v54 = vmul.f32 0.125, %v359_v50  ;;  %v512_v50 = vld [vmem:[%s3651_s2 + $0x270] sm:$0xff] }
 0x144   :  { %v379_v56 = vmul.f32 0.125, %v365_v53  ;;  %v377_v61 = vadd.f32 %v376_v59, %v375_v55  ;;  %v2007_v55 = vpack.c.bf16 %v517_v52, %v515_v51  ;;  %v521_v59 = vld [vmem:[%s3651_s2 + $0x2b8] sm:$0xff] }
 0x145   :  { %v382_v57 = vadd.f32 1e-05, %v378_v54  ;;  %v2005_v54 = vpack.c.bf16 %v512_v50, %v510_v49  ;;  %v2011_v62 = vpack.c.bf16 %v521_v59, %v519_v58  ;;  %v547_v49 = vld [vmem:[%s3651_s2 + $0x388] sm:$0xff]  ;;  %v549_v50 = vld [vmem:[%s3651_s2 + $0x398] sm:$0xff]  ;;  %v550_v59 = vld [vmem:[%s3651_s2 + $0x3a0] sm:$0xff] }
 0x146   :  { %v383_v60 = vadd.f32 1e-05, %v379_v56  ;;  %v381_v63 = vmul.f32 0.125, %v377_v61  ;;  %v514_v56 = vld [vmem:[%s3651_s2 + $0x280] sm:$0xff]  ;;  %v2039_v52 = vpack.c.bf16 %v549_v50, %v547_v49  ;;  %v833_v49 = vld [vmem:[#allocation5 + $0x1e8] sm:$0xff] }
 0x147   :  { %2325 = vrsqrt.f32 %v382_v57  ;;  %v516_v57 = vld [vmem:[%s3651_s2 + $0x290] sm:$0xff] }
 0x148   :  { %2327 = vrsqrt.f32 %v383_v60  ;;  %v385_v0 = vadd.f32 1e-05, %v381_v63  ;;  %v2009_v61 = vpack.c.bf16 %v516_v57, %v514_v56  ;;  %v518_v63 = vld [vmem:[%s3651_s2 + $0x2a0] sm:$0xff]  ;;  %v553_v56 = vld [vmem:[%s3651_s2 + $0x3b8] sm:$0xff] }
 0x14a   :  { %2329 = vrsqrt.f32 %v385_v0  ;;  %v520_v0 = vld [vmem:[%s3651_s2 + $0x2b0] sm:$0xff] }
 0x151   :  { %v2326_v3 = vpop.eup %2325 }
 0x152   :  { %v2328_v7 = vpop.eup %2327  ;;  %v390_v8 = vmul.f32 %v2326_v3, %v2858_v24  ;;  %v525_v3 = vld [vmem:[%s3651_s2 + $0x2d8] sm:$0xff] }
 0x153   :  { %v391_v9 = vmul.f32 %v2328_v7, %v2863_v26  ;;  %v505_v26 = vld [vmem:[%s3651_s2 + $0x238] sm:$0xff]  ;;  %v2013_v7 = vpack.c.bf16 %v520_v0, %v518_v63 }
 0x154   :  { %v397_v10 = vrot.slane %v390_v8, %v2890_v2  ;;  %v2330_v18 = vpop.eup %2329  ;;  %v1995_v31 = vpack.c.bf16 %v505_v26, %v503_v21  ;;  %v2015_v8 = vpack.c.bf16 %v525_v3, %v523_v1  ;;  %v2021_v26 = vpack.c.bf16 %v528_v17, %v526_v16  ;;  %v557_v63 = vld [vmem:[%s3651_s2 + $0x3d8] sm:$0xff] }
 0x155   :  { %v401_v12 = vrot.slane %v391_v9, %v2890_v2  ;;  %v393_v24 = vmul.f32 %v2330_v18, %v2873_v44  ;;  %v506_v44 = vld [vmem:[%s3651_s2 + $0x240] sm:$0xff]  ;;  %v531_v18 = vld [vmem:[%s3651_s2 + $0x308] sm:$0xff]  ;;  %v425_v17 = vrot.slane %v2879_v5, %v2893_v6 }
 0x156   :  { %v410_v14 = vmul.f32 %v397_v10, %v346_v20  ;;  %v2916_v20 = vsub.f32 %v315_v38, %v344_v11  ;;  %v2001_v47 = vpack.c.bf16 %v508_v42, %v506_v44  ;;  %v522_v9 = vld [vmem:[%s3651_s2 + $0x2c0] sm:$0xff]  ;;  %v524_v10 = vld [vmem:[%s3651_s2 + $0x2d0] sm:$0xff]  ;;  %v527_v11 = vld [vmem:[%s3651_s2 + $0x2e8] sm:$0xff] }
 0x157   :  { %v411_v19 = vmul.f32 %v401_v12, %v347_v27  ;;  %v502_v27 = vld [vmem:[%s3651_s2 + $0x220] sm:$0xff]  ;;  %v409_v33 = vrot.slane %v393_v24, %v2890_v2  ;;  %v529_v12 = vld [vmem:[%s3651_s2 + $0x2f8] sm:$0xff]  ;;  %v540_v42 = vld [vmem:[%s3651_s2 + $0x350] sm:$0xff] }
 0x158   :  { %v430_v30 = vadd.f32 %v417_v15, %v410_v14  ;;  %v352_v39 = vmul.f32 %v2916_v20, %v2916_v20  ;;  %v1997_v40 = vpack.c.bf16 %v504_v32, %v502_v27  ;;  %v2017_v14 = vpack.c.bf16 %v524_v10, %v522_v9  ;;  %v538_v44 = vld [vmem:[%s3651_s2 + $0x340] sm:$0xff]  ;;  %v561_v9 = vld [vmem:[%s3651_s2 + $0x3f8] sm:$0xff] }
 0x159   :  { %v431_v28 = vadd.f32 %v421_v13, %v411_v19  ;;  %v413_v38 = vmul.f32 %v409_v33, %v2885_v36  ;;  %v511_v36 = vld [vmem:[%s3651_s2 + $0x268] sm:$0xff]  ;;  %v2019_v15 = vpack.c.bf16 %v529_v12, %v527_v11  ;;  %v533_v19 = vld [vmem:[%s3651_s2 + $0x318] sm:$0xff] }
 0x15a   :  { %v366_v46 = vrot.slane %v352_v39, 4  ;;  %v2003_v48 = vpack.c.bf16 %v513_v45, %v511_v36  ;;  %v2023_v24 = vpack.c.bf16 %v533_v19, %v531_v18  ;;  %v545_v36 = vld [vmem:[%s3651_s2 + $0x378] sm:$0xff]  ;;  %v2033_v45 = vpack.c.bf16 %v540_v42, %v538_v44  ;;  %v788_v19 = vld [vmem:[#allocation5 + $0x80] sm:$0xff]  ;;  %v821_v42 = vld [vmem:[#allocation5 + $0x188] sm:$0xff] }
 0x15b   :  { %634 = vmatprep.mubr.f32.mxu0 %v431_v28  ;;  %v433_v43 = vadd.f32 %v429_v34, %v413_v38  ;;  %v530_v28 = vld [vmem:[%s3651_s2 + $0x300] sm:$0xff]  ;;  %v541_v38 = vld [vmem:[%s3651_s2 + $0x358] sm:$0xff] }
 0x15c   :  { %635 = vmatmul.mubr.f32.vlgmr.msra.gmra.mrb[2].mxu0 %v430_v30  ;;  %v367_v53 = vadd.f32 %v366_v46, %v352_v39  ;;  %v535_v30 = vld [vmem:[%s3651_s2 + $0x328] sm:$0xff]  ;;  %v534_v34 = vld [vmem:[%s3651_s2 + $0x320] sm:$0xff] }
 0x15d   :  { %1994 = vmatpush1.bf16.msra.mxu0 %v1993_v29  ;;  %705 = vmatprep.mubr.f32.mxu0 %v433_v43  ;;  %v532_v29 = vld [vmem:[%s3651_s2 + $0x310] sm:$0xff]  ;;  %v543_v43 = vld [vmem:[%s3651_s2 + $0x368] sm:$0xff] }
 0x15e   :  { %1996 = vmatprep.subr.bf16.mxu0 %v1995_v31  ;;  %v368_v60 = vrot.slane %v367_v53, 2  ;;  %v537_v31 = vld [vmem:[%s3651_s2 + $0x338] sm:$0xff]  ;;  %v2025_v32 = vpack.c.bf16 %v532_v29, %v530_v28  ;;  %v2035_v46 = vpack.c.bf16 %v545_v36, %v543_v43  ;;  %v801_v28 = vld [vmem:[#allocation5 + $0xe8] sm:$0xff] }
 0x15f   :  { %v2027_v33 = vpack.c.bf16 %v537_v31, %v535_v30  ;;  %v796_v30 = vld [vmem:[#allocation5 + $0xc0] sm:$0xff]  ;;  %v825_v43 = vld [vmem:[#allocation5 + $0x1a8] sm:$0xff] }
 0x160   :  { %v369_v4 = vadd.f32 %v368_v60, %v367_v53  ;;  %v546_v53 = vld [vmem:[%s3651_s2 + $0x380] sm:$0xff]  ;;  %v552_v60 = vld [vmem:[%s3651_s2 + $0x3b0] sm:$0xff]  ;;  %v2079_v36 = vpack.c.bf16 %v825_v43, %v821_v42  ;;  %v775_v43 = vld [vmem:[#allocation5 + $0x18] sm:$0xff] }
 0x161   :  { %1998 = vmatpush1.bf16.msra.mxu0 %v1997_v40  ;;  %v2029_v40 = vpack.c.bf16 %v536_v35, %v534_v34  ;;  %v2045_v0 = vpack.c.bf16 %v552_v60, %v550_v59  ;;  %v800_v31 = vld [vmem:[#allocation5 + $0xe0] sm:$0xff]  ;;  %v845_v60 = vld [vmem:[#allocation5 + $0x248] sm:$0xff] }
 0x162   :  { %2000 = vmatprep.subr.bf16.mxu0 %v1999_v41  ;;  %v370_v13 = vrot.slane %v369_v4, 1  ;;  %v2031_v41 = vpack.c.bf16 %v541_v38, %v539_v37  ;;  %v804_v34 = vld [vmem:[#allocation5 + $0x100] sm:$0xff]  ;;  %v813_v37 = vld [vmem:[#allocation5 + $0x148] sm:$0xff] }
 0x163   :  { %v817_v38 = vld [vmem:[#allocation5 + $0x168] sm:$0xff] }
 0x164   :  { %v371_v21 = vadd.f32 %v370_v13, %v369_v4  ;;  %v554_v4 = vld [vmem:[%s3651_s2 + $0x3c0] sm:$0xff] }
 0x165   :  { %2002 = vmatpush1.bf16.msra.mxu0 %v2001_v47  ;;  %v542_v47 = vld [vmem:[%s3651_s2 + $0x360] sm:$0xff] }
 0x166   :  { %2004 = vmatprep.subr.bf16.mxu0 %v2003_v48  ;;  %v380_v27 = vmul.f32 0.125, %v371_v21  ;;  %v544_v48 = vld [vmem:[%s3651_s2 + $0x370] sm:$0xff]  ;;  %v558_v13 = vld [vmem:[%s3651_s2 + $0x3e0] sm:$0xff] }
 0x167   :  { %v2037_v51 = vpack.c.bf16 %v544_v48, %v542_v47  ;;  %v792_v21 = vld [vmem:[#allocation5 + $0xa0] sm:$0xff]  ;;  %v829_v48 = vld [vmem:[#allocation5 + $0x1c8] sm:$0xff] }
 0x168   :  { %v384_v39 = vadd.f32 1e-05, %v380_v27  ;;  %v2069_v27 = vpack.c.bf16 %v800_v31, %v796_v30  ;;  %v2083_v50 = vpack.c.bf16 %v833_v49, %v829_v48  ;;  %v876_v31 = vld [vmem:[#allocation5 + $0x340] sm:$0xff] }
 0x169   :  { %2006 = vmatpush1.bf16.msra.mxu0 %v2005_v54  ;;  %v548_v54 = vld [vmem:[%s3651_s2 + $0x390] sm:$0xff] }
 0x16a   :  { %2008 = vmatprep.subr.bf16.mxu0 %v2007_v55  ;;  %2331 = vrsqrt.f32 %v384_v39  ;;  %v551_v55 = vld [vmem:[%s3651_s2 + $0x3a8] sm:$0xff]  ;;  %v2041_v57 = vpack.c.bf16 %v548_v54, %v546_v53  ;;  %v2075_v39 = vpack.c.bf16 %v817_v38, %v813_v37 }
 0x16b   :  { %v2043_v58 = vpack.c.bf16 %v553_v56, %v551_v55  ;;  %v837_v54 = vld [vmem:[#allocation5 + $0x208] sm:$0xff] }
 0x16c   :  { %v841_v55 = vld [vmem:[#allocation5 + $0x228] sm:$0xff] }
 0x16d   :  { %2010 = vmatpush1.bf16.msra.mxu0 %v2009_v61  ;;  %v2087_v56 = vpack.c.bf16 %v841_v55, %v837_v54  ;;  %v893_v37 = vld [vmem:[#allocation5 + $0x3c8] sm:$0xff] }
 0x16e   :  { %2012 = vmatprep.subr.bf16.mxu0 %v2011_v62  ;;  %v555_v62 = vld [vmem:[%s3651_s2 + $0x3c8] sm:$0xff] }
 0x16f   :  { %v2047_v3 = vpack.c.bf16 %v557_v63, %v555_v62  ;;  %v844_v63 = vld [vmem:[#allocation5 + $0x240] sm:$0xff]  ;;  %v897_v38 = vld [vmem:[#allocation5 + $0x3e8] sm:$0xff] }
 0x171   :  { %2014 = vmatpush1.bf16.msra.mxu0 %v2013_v7  ;;  %v556_v7 = vld [vmem:[%s3651_s2 + $0x3d0] sm:$0xff] }
 0x172   :  { %2016 = vmatprep.subr.bf16.mxu0 %v2015_v8  ;;  %v559_v8 = vld [vmem:[%s3651_s2 + $0x3e8] sm:$0xff]  ;;  %v2049_v10 = vpack.c.bf16 %v556_v7, %v554_v4 }
 0x173   :  { %v2051_v12 = vpack.c.bf16 %v561_v9, %v559_v8  ;;  %v857_v4 = vld [vmem:[#allocation5 + $0x2a8] sm:$0xff]  ;;  %v852_v8 = vld [vmem:[#allocation5 + $0x280] sm:$0xff] }
 0x174   :  { %v2332_v61 = vpop.eup %2331  ;;  %v856_v9 = vld [vmem:[#allocation5 + $0x2a0] sm:$0xff] }
 0x175   :  { %2018 = vmatpush1.bf16.msra.mxu0 %v2017_v14  ;;  %v392_v1 = vmul.f32 %v2332_v61, %v2879_v5  ;;  %v560_v14 = vld [vmem:[%s3651_s2 + $0x3f0] sm:$0xff]  ;;  %v808_v5 = vld [vmem:[#allocation5 + $0x120] sm:$0xff]  ;;  %v849_v61 = vld [vmem:[#allocation5 + $0x268] sm:$0xff] }
 0x176   :  { %2020 = vmatprep.subr.bf16.mxu0 %v2019_v15  ;;  %v2053_v15 = vpack.c.bf16 %v560_v14, %v558_v13  ;;  %v2073_v35 = vpack.c.bf16 %v808_v5, %v804_v34  ;;  %v2091_v62 = vpack.c.bf16 %v849_v61, %v845_v60  ;;  %v860_v14 = vld [vmem:[#allocation5 + $0x2c0] sm:$0xff] }
 0x177   :  { %v405_v11 = vrot.slane %v392_v1, %v2890_v2  ;;  %v884_v5 = vld [vmem:[#allocation5 + $0x380] sm:$0xff] }
 0x179   :  { %2022 = vmatpush1.bf16.msra.mxu0 %v2021_v26  ;;  %v412_v16 = vmul.f32 %v405_v11, %v2916_v20  ;;  %v2065_v26 = vpack.c.bf16 %v792_v21, %v788_v19  ;;  %v805_v20 = vld [vmem:[#allocation5 + $0x108] sm:$0xff]  ;;  %v868_v19 = vld [vmem:[#allocation5 + $0x300] sm:$0xff] }
 0x17a   :  { %2024 = vmatprep.subr.bf16.mxu0 %v2023_v24  ;;  %v797_v24 = vld [vmem:[#allocation5 + $0xc8] sm:$0xff] }
 0x17b   :  { %v432_v18 = vadd.f32 %v425_v17, %v412_v16  ;;  %2066 = vmatpush1.bf16.msra.mxu1 %v2065_v26  ;;  %v2067_v29 = vpack.c.bf16 %v801_v28, %v797_v24  ;;  %v861_v11 = vld [vmem:[#allocation5 + $0x2c8] sm:$0xff]  ;;  %v872_v26 = vld [vmem:[#allocation5 + $0x320] sm:$0xff] }
 0x17c   :  { %v869_v17 = vld [vmem:[#allocation5 + $0x308] sm:$0xff] }
 0x17d   :  { %2026 = vmatpush1.bf16.msra.mxu0 %v2025_v32  ;;  %2068 = vmatprep.subr.bf16.mxu1 %v2067_v29  ;;  %v809_v32 = vld [vmem:[#allocation5 + $0x128] sm:$0xff]  ;;  %v2105_v29 = vpack.c.bf16 %v872_v26, %v868_v19 }
 0x17e   :  { %2028 = vmatprep.subr.bf16.mxu0 %v2027_v33  ;;  %v2071_v33 = vpack.c.bf16 %v809_v32, %v805_v20  ;;  %v877_v24 = vld [vmem:[#allocation5 + $0x348] sm:$0xff] }
 0x17f   :  { %2070 = vmatpush1.bf16.msra.mxu1 %v2069_v27  ;;  %v881_v28 = vld [vmem:[#allocation5 + $0x368] sm:$0xff]  ;;  %v880_v27 = vld [vmem:[#allocation5 + $0x360] sm:$0xff] }
 0x180   :  { %2072 = vmatprep.subr.bf16.mxu1 %v2071_v33  ;;  %v2107_v30 = vpack.c.bf16 %v881_v28, %v877_v24  ;;  %v885_v20 = vld [vmem:[#allocation5 + $0x388] sm:$0xff]  ;;  %v2109_v33 = vpack.c.bf16 %v880_v27, %v876_v31  ;;  %v3118_v27 = vsub.s32 4, %v2853_v22 }
 0x181   :  { %2030 = vmatpush1.bf16.msra.mxu0 %v2029_v40  ;;  %v812_v40 = vld [vmem:[#allocation5 + $0x140] sm:$0xff]  ;;  %v889_v32 = vld [vmem:[#allocation5 + $0x3a8] sm:$0xff] }
 0x182   :  { %2032 = vmatprep.subr.bf16.mxu0 %v2031_v41  ;;  %v816_v41 = vld [vmem:[#allocation5 + $0x160] sm:$0xff]  ;;  %v2111_v34 = vpack.c.bf16 %v889_v32, %v885_v20 }
 0x183   :  { %2074 = vmatpush1.bf16.msra.mxu1 %v2073_v35  ;;  %v2077_v44 = vpack.c.bf16 %v816_v41, %v812_v40  ;;  %v888_v35 = vld [vmem:[#allocation5 + $0x3a0] sm:$0xff]  ;;  %v2115_v40 = vpack.c.bf16 %v897_v38, %v893_v37 }
 0x184   :  { %2076 = vmatprep.subr.bf16.mxu1 %v2075_v39  ;;  %v2113_v39 = vpack.c.bf16 %v888_v35, %v884_v5  ;;  %v892_v41 = vld [vmem:[#allocation5 + $0x3c0] sm:$0xff] }
 0x185   :  { %2034 = vmatpush1.bf16.msra.mxu0 %v2033_v45  ;;  %v820_v45 = vld [vmem:[#allocation5 + $0x180] sm:$0xff] }
 0x186   :  { %2036 = vmatprep.subr.bf16.mxu0 %v2035_v46  ;;  %v824_v46 = vld [vmem:[#allocation5 + $0x1a0] sm:$0xff] }
 0x187   :  { %2078 = vmatpush1.bf16.msra.mxu1 %v2077_v44  ;;  %v2081_v47 = vpack.c.bf16 %v824_v46, %v820_v45  ;;  %v896_v44 = vld [vmem:[#allocation5 + $0x3e0] sm:$0xff] }
 0x188   :  { %2080 = vmatprep.subr.bf16.mxu1 %v2079_v36  ;;  %v2117_v42 = vpack.c.bf16 %v896_v44, %v892_v41  ;;  %v779_v36 = vld [vmem:[#allocation5 + $0x38] sm:$0xff]  ;;  %v3106_v46 = vld [vmem:[%s3657_s8] sm:$0x1f]  ;;  %v774_v44 = vld [vmem:[#allocation5 + $0x10] sm:$0xff] }
 0x189   :  { %2038 = vmatpush1.bf16.msra.mxu0 %v2037_v51  ;;  %v828_v51 = vld [vmem:[#allocation5 + $0x1c0] sm:$0xff]  ;;  %v2119_v45 = vpack.c.bf16 %v779_v36, %v775_v43  ;;  %v565_v48 = vrot.slane %v3106_v46, %v2856_v23  ;;  %v755_v20 = vrot.slane %v3106_v46, %v2861_v25  ;;  %v765_v41 = vrot.slane %v3106_v46, %v2890_v2  ;;  %v783_v36 = vld [vmem:[#allocation5 + $0x58] sm:$0xff] }
 0x18a   :  { %2040 = vmatprep.subr.bf16.mxu0 %v2039_v52  ;;  %v832_v52 = vld [vmem:[#allocation5 + $0x1e0] sm:$0xff] }
 0x18b   :  { %2082 = vmatpush1.bf16.msra.mxu1 %v2081_v47  ;;  %v2085_v53 = vpack.c.bf16 %v832_v52, %v828_v51  ;;  %v3111_v47 = vld [vmem:[%s3657_s8 + $0x8] sm:$0x1f] }
 0x18c   :  { %2084 = vmatprep.subr.bf16.mxu1 %v2083_v50  ;;  %v569_v49 = vrot.slane %v3111_v47, %v2856_v23  ;;  %v769_v38 = vrot.slane %v3111_v47, %v2890_v2 }
 0x18d   :  { %2042 = vmatpush1.bf16.msra.mxu0 %v2041_v57  ;;  %v836_v57 = vld [vmem:[#allocation5 + $0x200] sm:$0xff] }
 0x18e   :  { %2044 = vmatprep.subr.bf16.mxu0 %v2043_v58  ;;  %v840_v58 = vld [vmem:[#allocation5 + $0x220] sm:$0xff] }
 0x18f   :  { %2086 = vmatpush1.bf16.msra.mxu1 %v2085_v53  ;;  %v2089_v59 = vpack.c.bf16 %v840_v58, %v836_v57 }
 0x190   :  { %2088 = vmatprep.subr.bf16.mxu1 %v2087_v56 }
 0x191   :  { %2046 = vmatpush1.bf16.msra.mxu0 %v2045_v0  ;;  %v848_v0 = vld [vmem:[#allocation5 + $0x260] sm:$0xff] }
 0x192   :  { %2048 = vmatprep.subr.bf16.mxu0 %v2047_v3  ;;  %v2093_v1 = vpack.c.bf16 %v848_v0, %v844_v63  ;;  %v853_v3 = vld [vmem:[#allocation5 + $0x288] sm:$0xff] }
 0x193   :  { %2090 = vmatpush1.bf16.msra.mxu1 %v2089_v59  ;;  %v2095_v7 = vpack.c.bf16 %v857_v4, %v853_v3 }
 0x194   :  { %2092 = vmatprep.subr.bf16.mxu1 %v2091_v62 }
 0x195   :  { %2050 = vmatpush1.bf16.msra.mxu0 %v2049_v10  ;;  %v2097_v10 = vpack.c.bf16 %v856_v9, %v852_v8 }
 0x196   :  { %2052 = vmatprep.subr.bf16.mxu0 %v2051_v12  ;;  %v865_v12 = vld [vmem:[#allocation5 + $0x2e8] sm:$0xff] }
 0x197   :  { %2094 = vmatpush1.bf16.msra.mxu1 %v2093_v1  ;;  %v2099_v13 = vpack.c.bf16 %v865_v12, %v861_v11 }
 0x198   :  { %2096 = vmatprep.subr.bf16.mxu1 %v2095_v7 }
 0x199   :  { %2054 = vmatpush1.bf16.msra.mxu0 %v2053_v15  ;;  %v864_v15 = vld [vmem:[#allocation5 + $0x2e0] sm:$0xff] }
 0x19a   :  { %v2101_v16 = vpack.c.bf16 %v864_v15, %v860_v14 }
 0x19b   :  { %2098 = vmatpush1.bf16.msra.mxu1 %v2097_v10 }
 0x19c   :  { %706 = vmatmul.mubr.f32.vlgmr.msra.gmra.mrb[2].mxu0 %v432_v18  ;;  %2100 = vmatprep.subr.bf16.mxu1 %v2099_v13  ;;  %v873_v18 = vld [vmem:[#allocation5 + $0x328] sm:$0xff] }
 0x19d   :  { %v2103_v21 = vpack.c.bf16 %v873_v18, %v869_v17 }
 0x19f   :  { %2102 = vmatpush1.bf16.msra.mxu1 %v2101_v16 }
 0x1a0   :  { %2104 = vmatprep.subr.bf16.mxu1 %v2103_v21 }
 0x1a3   :  { %2106 = vmatpush1.bf16.msra.mxu1 %v2105_v29 }
 0x1a4   :  { %2108 = vmatprep.subr.bf16.mxu1 %v2107_v30 }
 0x1a7   :  { %2110 = vmatpush1.bf16.msra.mxu1 %v2109_v33  ;;  %v759_v33 = vrot.slane %v3111_v47, %v2861_v25 }
 0x1a8   :  { %2112 = vmatprep.subr.bf16.mxu1 %v2111_v34  ;;  %v1421_v34 = vrot.slane %v3111_v47, %v2893_v6 }
 0x1ab   :  { %2114 = vmatpush1.bf16.msra.mxu1 %v2113_v39  ;;  %v1431_v39 = vrot.slane %v3111_v47, %v3118_v27  ;;  %v786_v47 = vld [vmem:[#allocation5 + $0x70] sm:$0xff] }
 0x1ac   :  { %2116 = vmatprep.subr.bf16.mxu1 %v2115_v40 }
 0x1af   :  { %2118 = vmatpush1.bf16.msra.mxu1 %v2117_v42  ;;  %v778_v42 = vld [vmem:[#allocation5 + $0x30] sm:$0xff] }
 0x1b0   :  { %2120 = vmatprep.subr.bf16.mxu1 %v2119_v45  ;;  %v787_v45 = vld [vmem:[#allocation5 + $0x78] sm:$0xff] }
 0x26f   :  { %v707_v50 = vpop.f32.mrb[2].mxu0 }
 0x270   :  { %v2311_v51 = vadd.f32 %v707_v50, %v565_v48  ;;  %v709_v52 = vpop.f32.mrb[3].mxu0  ;;  %v2121_v50 = vpack.c.bf16 %v778_v42, %v774_v44  ;;  %v851_v44 = vld [vmem:[#allocation5 + $0x278] sm:$0xff] }
 0x271   :  { %v2312_v53 = vadd.f32 %v709_v52, %v569_v49 }
 0x272   :  { %v714_v54 = vrot.slane %v2311_v51, 4  ;;  %712 = vst [vmem:[#allocation8] sm:$0xff] %v2311_v51 }
 0x273   :  { %v720_v55 = vrot.slane %v2312_v53, 4  ;;  %713 = vst [vmem:[#allocation8 + $0x8] sm:$0xff] %v2312_v53 }
 0x274   :  { %v715_v56 = vadd.f32 %v2311_v51, %v714_v54  ;;  %v782_v54 = vld [vmem:[#allocation5 + $0x50] sm:$0xff] }
 0x275   :  { %v721_v57 = vadd.f32 %v2312_v53, %v720_v55  ;;  %v791_v55 = vld [vmem:[#allocation5 + $0x98] sm:$0xff] }
 0x276   :  { %v716_v58 = vrot.slane %v715_v56, 2 }
 0x277   :  { %v722_v59 = vrot.slane %v721_v57, 2 }
 0x278   :  { %v717_v60 = vadd.f32 %v716_v58, %v715_v56  ;;  %v795_v56 = vld [vmem:[#allocation5 + $0xb8] sm:$0xff] }
 0x279   :  { %v723_v61 = vadd.f32 %v722_v59, %v721_v57  ;;  %v2125_v57 = vpack.c.bf16 %v786_v47, %v782_v54  ;;  %v2127_v58 = vpack.c.bf16 %v795_v56, %v791_v55  ;;  %v790_v59 = vld [vmem:[#allocation5 + $0x90] sm:$0xff]  ;;  %v863_v55 = vld [vmem:[#allocation5 + $0x2d8] sm:$0xff] }
 0x27a   :  { %v718_v62 = vrot.slane %v717_v60, 1  ;;  %v854_v54 = vld [vmem:[#allocation5 + $0x290] sm:$0xff]  ;;  %v867_v56 = vld [vmem:[#allocation5 + $0x2f8] sm:$0xff] }
 0x27b   :  { %v724_v63 = vrot.slane %v723_v61, 1  ;;  %v858_v47 = vld [vmem:[#allocation5 + $0x2b0] sm:$0xff] }
 0x27c   :  { %v719_v0 = vadd.f32 %v718_v62, %v717_v60  ;;  %v794_v60 = vld [vmem:[#allocation5 + $0xb0] sm:$0xff]  ;;  %v803_v62 = vld [vmem:[#allocation5 + $0xf8] sm:$0xff] }
 0x27d   :  { %v725_v1 = vadd.f32 %v724_v63, %v723_v61  ;;  %v799_v61 = vld [vmem:[#allocation5 + $0xd8] sm:$0xff]  ;;  %v2129_v63 = vpack.c.bf16 %v794_v60, %v790_v59  ;;  %v862_v59 = vld [vmem:[#allocation5 + $0x2d0] sm:$0xff] }
 0x27e   :  { %v726_v3 = vmul.f32 0.125, %v719_v0  ;;  %v2131_v0 = vpack.c.bf16 %v803_v62, %v799_v61  ;;  %v866_v60 = vld [vmem:[#allocation5 + $0x2f0] sm:$0xff]  ;;  %v871_v61 = vld [vmem:[#allocation5 + $0x318] sm:$0xff] }
 0x27f   :  { %v727_v4 = vmul.f32 0.125, %v725_v1  ;;  %v798_v1 = vld [vmem:[#allocation5 + $0xd0] sm:$0xff]  ;;  %v875_v62 = vld [vmem:[#allocation5 + $0x338] sm:$0xff] }
 0x280   :  { %v728_v7 = vsub.f32 %v2311_v51, %v726_v3  ;;  %v802_v3 = vld [vmem:[#allocation5 + $0xf0] sm:$0xff] }
 0x281   :  { %v729_v8 = vsub.f32 %v2312_v53, %v727_v4  ;;  %v2123_v53 = vpack.c.bf16 %v787_v45, %v783_v36  ;;  %v807_v4 = vld [vmem:[#allocation5 + $0x118] sm:$0xff]  ;;  %v846_v36 = vld [vmem:[#allocation5 + $0x250] sm:$0xff] }
 0x282   :  { %v730_v9 = vmul.f32 %v728_v7, %v728_v7  ;;  %v850_v45 = vld [vmem:[#allocation5 + $0x270] sm:$0xff] }
 0x283   :  { %v731_v10 = vmul.f32 %v729_v8, %v729_v8 }
 0x284   :  { %v732_v11 = vrot.slane %v730_v9, 4 }
 0x285   :  { %v738_v12 = vrot.slane %v731_v10, 4 }
 0x286   :  { %v733_v13 = vadd.f32 %v732_v11, %v730_v9  ;;  %v810_v11 = vld [vmem:[#allocation5 + $0x130] sm:$0xff] }
 0x287   :  { %v739_v14 = vadd.f32 %v738_v12, %v731_v10  ;;  %v806_v10 = vld [vmem:[#allocation5 + $0x110] sm:$0xff]  ;;  %v815_v12 = vld [vmem:[#allocation5 + $0x158] sm:$0xff] }
 0x288   :  { %v734_v15 = vrot.slane %v733_v13, 2 }
 0x289   :  { %v740_v16 = vrot.slane %v739_v14, 2 }
 0x28a   :  { %v735_v17 = vadd.f32 %v734_v15, %v733_v13  ;;  %v819_v13 = vld [vmem:[#allocation5 + $0x178] sm:$0xff] }
 0x28b   :  { %v741_v18 = vadd.f32 %v740_v16, %v739_v14  ;;  %v2137_v14 = vpack.c.bf16 %v810_v11, %v806_v10  ;;  %v2139_v15 = vpack.c.bf16 %v819_v13, %v815_v12  ;;  %v814_v16 = vld [vmem:[#allocation5 + $0x150] sm:$0xff]  ;;  %v887_v12 = vld [vmem:[#allocation5 + $0x398] sm:$0xff] }
 0x28c   :  { %v736_v19 = vrot.slane %v735_v17, 1  ;;  %v878_v10 = vld [vmem:[#allocation5 + $0x350] sm:$0xff]  ;;  %v891_v13 = vld [vmem:[#allocation5 + $0x3b8] sm:$0xff] }
 0x28d   :  { %v742_v21 = vrot.slane %v741_v18, 1  ;;  %v882_v11 = vld [vmem:[#allocation5 + $0x370] sm:$0xff] }
 0x28e   :  { %v737_v26 = vadd.f32 %v736_v19, %v735_v17  ;;  %v818_v17 = vld [vmem:[#allocation5 + $0x170] sm:$0xff]  ;;  %v827_v19 = vld [vmem:[#allocation5 + $0x1b8] sm:$0xff] }
 0x28f   :  { %v743_v24 = vadd.f32 %v742_v21, %v741_v18  ;;  %v823_v18 = vld [vmem:[#allocation5 + $0x198] sm:$0xff]  ;;  %v2141_v21 = vpack.c.bf16 %v818_v17, %v814_v16  ;;  %v886_v16 = vld [vmem:[#allocation5 + $0x390] sm:$0xff] }
 0x290   :  { %v744_v28 = vmul.f32 0.125, %v737_v26  ;;  %v2143_v26 = vpack.c.bf16 %v827_v19, %v823_v18  ;;  %v890_v17 = vld [vmem:[#allocation5 + $0x3b0] sm:$0xff]  ;;  %v895_v18 = vld [vmem:[#allocation5 + $0x3d8] sm:$0xff] }
 0x291   :  { %v745_v29 = vmul.f32 0.125, %v743_v24  ;;  %v822_v24 = vld [vmem:[#allocation5 + $0x190] sm:$0xff]  ;;  %v899_v19 = vld [vmem:[#allocation5 + $0x3f8] sm:$0xff] }
 0x292   :  { %v746_v30 = vadd.f32 1e-05, %v744_v28  ;;  %v826_v28 = vld [vmem:[#allocation5 + $0x1b0] sm:$0xff] }
 0x293   :  { %v747_v31 = vadd.f32 1e-05, %v745_v29  ;;  %v831_v29 = vld [vmem:[#allocation5 + $0x1d8] sm:$0xff] }
 0x294   :  { %2333 = vrsqrt.f32 %v746_v30  ;;  %v835_v30 = vld [vmem:[#allocation5 + $0x1f8] sm:$0xff] }
 0x295   :  { %2335 = vrsqrt.f32 %v747_v31  ;;  %v2145_v31 = vpack.c.bf16 %v826_v28, %v822_v24  ;;  %v894_v24 = vld [vmem:[#allocation5 + $0x3d0] sm:$0xff] }
 0x296   :  { %v898_v28 = vld [vmem:[#allocation5 + $0x3f0] sm:$0xff] }
 0x29e   :  { %v2334_v32 = vpop.eup %2333 }
 0x29f   :  { %v2336_v5 = vpop.eup %2335  ;;  %v3126_v35 = vmul.f32 %v2334_v32, %v728_v7  ;;  %v811_v7 = vld [vmem:[#allocation5 + $0x138] sm:$0xff]  ;;  %v830_v32 = vld [vmem:[#allocation5 + $0x1d0] sm:$0xff] }
 0x2a0   :  { %v751_v37 = vmul.f32 %v2336_v5, %v729_v8  ;;  %v2133_v8 = vpack.c.bf16 %v802_v3, %v798_v1  ;;  %v2135_v9 = vpack.c.bf16 %v811_v7, %v807_v4  ;;  %v843_v5 = vld [vmem:[#allocation5 + $0x238] sm:$0xff]  ;;  %v870_v1 = vld [vmem:[#allocation5 + $0x310] sm:$0xff] }
 0x2a1   :  { %v760_v40 = vmul.f32 %v755_v20, %v3126_v35  ;;  %v2147_v20 = vpack.c.bf16 %v835_v30, %v831_v29  ;;  %v874_v3 = vld [vmem:[#allocation5 + $0x330] sm:$0xff]  ;;  %v879_v4 = vld [vmem:[#allocation5 + $0x358] sm:$0xff]  ;;  %v2181_v29 = vpack.c.bf16 %v898_v28, %v894_v24  ;;  %v1218_v30 = vld [vmem:[%s3653_s4 + $0x80] sm:$0xff] }
 0x2a2   :  { %v761_v43 = vmul.f32 %v759_v33, %v751_v37  ;;  %v1423_v48 = vmul.f32 %v1421_v34, %v751_v37  ;;  %v834_v33 = vld [vmem:[#allocation5 + $0x1f0] sm:$0xff]  ;;  %v839_v34 = vld [vmem:[#allocation5 + $0x218] sm:$0xff]  ;;  %v1251_v24 = vld [vmem:[%s3653_s4 + $0x188] sm:$0xff] }
 0x2a3   :  { %v3137_v52 = vadd.f32 %v765_v41, %v760_v40  ;;  %v2149_v37 = vpack.c.bf16 %v834_v33, %v830_v32  ;;  %v842_v40 = vld [vmem:[#allocation5 + $0x230] sm:$0xff]  ;;  %v847_v41 = vld [vmem:[#allocation5 + $0x258] sm:$0xff]  ;;  %v1202_v32 = vld [vmem:[%s3653_s4] sm:$0xff] }
 0x2a4   :  { %v771_v49 = vadd.f32 %v769_v38, %v761_v43  ;;  %v3135_v51 = vadd.f32 %v1431_v39, %v1423_v48  ;;  %v2151_v38 = vpack.c.bf16 %v843_v5, %v839_v34  ;;  %v838_v39 = vld [vmem:[#allocation5 + $0x210] sm:$0xff]  ;;  %v2155_v43 = vpack.c.bf16 %v851_v44, %v847_v41  ;;  %v855_v48 = vld [vmem:[#allocation5 + $0x298] sm:$0xff]  ;;  %v1203_v33 = vld [vmem:[%s3653_s4 + $0x8] sm:$0xff] }
 0x2a5   :  { %v2153_v42 = vpack.c.bf16 %v842_v40, %v838_v39  ;;  %v883_v7 = vld [vmem:[#allocation5 + $0x378] sm:$0xff]  ;;  %v2185_v34 = vpack.c.bf16 %v1203_v33, %v1202_v32  ;;  %v1222_v41 = vld [vmem:[%s3653_s4 + $0xa0] sm:$0xff]  ;;  %v1223_v44 = vld [vmem:[%s3653_s4 + $0xa8] sm:$0xff] }
 0x2a6   :  { %980 = vmatprep.mubr.f32.mxu1 %v771_v49  ;;  %v1221_v5 = vld [vmem:[%s3653_s4 + $0x98] sm:$0xff] }
 0x2a7   :  { %981 = vmatmul.mubr.f32.vlgmr.msra.gmra.mrb[2].mxu1 %v3137_v52  ;;  %v1205_v39 = vld [vmem:[%s3653_s4 + $0x18] sm:$0xff] }
 0x2a8   :  { %2122 = vmatpush1.bf16.msra.mxu1 %v2121_v50  ;;  %1051 = vmatprep.mubr.f32.mxu1 %v771_v49  ;;  %v859_v49 = vld [vmem:[#allocation5 + $0x2b8] sm:$0xff]  ;;  %v2157_v50 = vpack.c.bf16 %v850_v45, %v846_v36  ;;  %v1207_v36 = vld [vmem:[%s3653_s4 + $0x28] sm:$0xff] }
 0x2a9   :  { %2124 = vmatprep.subr.bf16.mxu1 %v2123_v53  ;;  %v2159_v53 = vpack.c.bf16 %v859_v49, %v855_v48  ;;  %v1224_v48 = vld [vmem:[%s3653_s4 + $0xb0] sm:$0xff]  ;;  %v1225_v49 = vld [vmem:[%s3653_s4 + $0xb8] sm:$0xff] }
 0x2aa   :  { %v1253_v32 = vld [vmem:[%s3653_s4 + $0x198] sm:$0xff] }
 0x2ac   :  { %2126 = vmatpush1.bf16.msra.mxu1 %v2125_v57  ;;  %v2161_v57 = vpack.c.bf16 %v858_v47, %v854_v54  ;;  %v1209_v54 = vld [vmem:[%s3653_s4 + $0x38] sm:$0xff] }
 0x2ad   :  { %2128 = vmatprep.subr.bf16.mxu1 %v2127_v58  ;;  %v2163_v58 = vpack.c.bf16 %v867_v56, %v863_v55  ;;  %v1226_v55 = vld [vmem:[%s3653_s4 + $0xc0] sm:$0xff]  ;;  %v1227_v56 = vld [vmem:[%s3653_s4 + $0xc8] sm:$0xff] }
 0x2b0   :  { %2130 = vmatpush1.bf16.msra.mxu1 %v2129_v63  ;;  %v2165_v63 = vpack.c.bf16 %v866_v60, %v862_v59  ;;  %v1211_v59 = vld [vmem:[%s3653_s4 + $0x48] sm:$0xff] }
 0x2b1   :  { %2132 = vmatprep.subr.bf16.mxu1 %v2131_v0  ;;  %v2167_v0 = vpack.c.bf16 %v875_v62, %v871_v61  ;;  %v1228_v61 = vld [vmem:[%s3653_s4 + $0xd0] sm:$0xff]  ;;  %v1229_v62 = vld [vmem:[%s3653_s4 + $0xd8] sm:$0xff] }
 0x2b4   :  { %2134 = vmatpush1.bf16.msra.mxu1 %v2133_v8  ;;  %v2169_v8 = vpack.c.bf16 %v874_v3, %v870_v1  ;;  %v1213_v1 = vld [vmem:[%s3653_s4 + $0x58] sm:$0xff] }
 0x2b5   :  { %2136 = vmatprep.subr.bf16.mxu1 %v2135_v9  ;;  %v2171_v9 = vpack.c.bf16 %v883_v7, %v879_v4  ;;  %v1230_v4 = vld [vmem:[%s3653_s4 + $0xe0] sm:$0xff]  ;;  %v1231_v7 = vld [vmem:[%s3653_s4 + $0xe8] sm:$0xff] }
 0x2b8   :  { %2138 = vmatpush1.bf16.msra.mxu1 %v2137_v14  ;;  %v2173_v14 = vpack.c.bf16 %v882_v11, %v878_v10  ;;  %v1215_v10 = vld [vmem:[%s3653_s4 + $0x68] sm:$0xff] }
 0x2b9   :  { %2140 = vmatprep.subr.bf16.mxu1 %v2139_v15  ;;  %v2175_v15 = vpack.c.bf16 %v891_v13, %v887_v12  ;;  %v1232_v12 = vld [vmem:[%s3653_s4 + $0xf0] sm:$0xff]  ;;  %v1233_v13 = vld [vmem:[%s3653_s4 + $0xf8] sm:$0xff] }
 0x2bc   :  { %2142 = vmatpush1.bf16.msra.mxu1 %v2141_v21  ;;  %v2177_v21 = vpack.c.bf16 %v890_v17, %v886_v16  ;;  %v1217_v16 = vld [vmem:[%s3653_s4 + $0x78] sm:$0xff] }
 0x2bd   :  { %2144 = vmatprep.subr.bf16.mxu1 %v2143_v26  ;;  %v2179_v26 = vpack.c.bf16 %v899_v19, %v895_v18  ;;  %v1450_v18 = vld [vmem:[%s3654_s5 + $0x80] sm:$0xff]  ;;  %v1451_v19 = vld [vmem:[%s3654_s5 + $0x88] sm:$0xff] }
 0x2c0   :  { %2146 = vmatpush1.bf16.msra.mxu1 %v2145_v31  ;;  %v1219_v31 = vld [vmem:[%s3653_s4 + $0x88] sm:$0xff] }
 0x2c1   :  { %2148 = vmatprep.subr.bf16.mxu1 %v2147_v20  ;;  %v2183_v20 = vpack.c.bf16 %v1219_v31, %v1218_v30  ;;  %v1235_v30 = vld [vmem:[%s3653_s4 + $0x108] sm:$0xff] }
 0x2c3   :  { %2184 = vmatprep.subr.bf16.mxu0 %v2183_v20  ;;  %v1252_v20 = vld [vmem:[%s3653_s4 + $0x190] sm:$0xff] }
 0x2c4   :  { %2150 = vmatpush1.bf16.msra.mxu1 %v2149_v37  ;;  %2186 = vmatpush3.bf16.msra.mxu0 %v2185_v34  ;;  %v2219_v33 = vpack.c.bf16 %v1253_v32, %v1252_v20  ;;  %v1236_v34 = vld [vmem:[%s3653_s4 + $0x110] sm:$0xff] }
 0x2c5   :  { %2152 = vmatprep.subr.bf16.mxu1 %v2151_v38  ;;  %v1204_v38 = vld [vmem:[%s3653_s4 + $0x10] sm:$0xff] }
 0x2c6   :  { %v2189_v40 = vpack.c.bf16 %v1205_v39, %v1204_v38  ;;  %v1255_v38 = vld [vmem:[%s3653_s4 + $0x1a8] sm:$0xff] }
 0x2c8   :  { %2154 = vmatpush1.bf16.msra.mxu1 %v2153_v42  ;;  %v2191_v42 = vpack.c.bf16 %v1223_v44, %v1222_v41  ;;  %v1239_v41 = vld [vmem:[%s3653_s4 + $0x128] sm:$0xff] }
 0x2c9   :  { %2156 = vmatprep.subr.bf16.mxu1 %v2155_v43  ;;  %v1206_v43 = vld [vmem:[%s3653_s4 + $0x20] sm:$0xff] }
 0x2ca   :  { %v2193_v45 = vpack.c.bf16 %v1207_v36, %v1206_v43  ;;  %v1257_v43 = vld [vmem:[%s3653_s4 + $0x1b8] sm:$0xff] }
 0x2cc   :  { %2158 = vmatpush1.bf16.msra.mxu1 %v2157_v50  ;;  %v2195_v50 = vpack.c.bf16 %v1225_v49, %v1224_v48  ;;  %v1241_v48 = vld [vmem:[%s3653_s4 + $0x138] sm:$0xff] }
 0x2cd   :  { %2160 = vmatprep.subr.bf16.mxu1 %v2159_v53  ;;  %v1208_v53 = vld [vmem:[%s3653_s4 + $0x30] sm:$0xff] }
 0x2ce   :  { %v2197_v47 = vpack.c.bf16 %v1209_v54, %v1208_v53  ;;  %v1259_v53 = vld [vmem:[%s3653_s4 + $0x1c8] sm:$0xff] }
 0x2d0   :  { %2162 = vmatpush1.bf16.msra.mxu1 %v2161_v57  ;;  %v2199_v57 = vpack.c.bf16 %v1227_v56, %v1226_v55  ;;  %v1243_v55 = vld [vmem:[%s3653_s4 + $0x148] sm:$0xff] }
 0x2d1   :  { %2164 = vmatprep.subr.bf16.mxu1 %v2163_v58  ;;  %v1210_v58 = vld [vmem:[%s3653_s4 + $0x40] sm:$0xff] }
 0x2d2   :  { %v2201_v60 = vpack.c.bf16 %v1211_v59, %v1210_v58  ;;  %v1261_v58 = vld [vmem:[%s3653_s4 + $0x1d8] sm:$0xff] }
 0x2d4   :  { %2166 = vmatpush1.bf16.msra.mxu1 %v2165_v63  ;;  %v2203_v63 = vpack.c.bf16 %v1229_v62, %v1228_v61  ;;  %v1245_v61 = vld [vmem:[%s3653_s4 + $0x158] sm:$0xff] }
 0x2d5   :  { %2168 = vmatprep.subr.bf16.mxu1 %v2167_v0  ;;  %v1212_v0 = vld [vmem:[%s3653_s4 + $0x50] sm:$0xff] }
 0x2d6   :  { %v2205_v3 = vpack.c.bf16 %v1213_v1, %v1212_v0  ;;  %v1263_v0 = vld [vmem:[%s3653_s4 + $0x1e8] sm:$0xff] }
 0x2d8   :  { %2170 = vmatpush1.bf16.msra.mxu1 %v2169_v8  ;;  %v2207_v8 = vpack.c.bf16 %v1231_v7, %v1230_v4  ;;  %v1247_v4 = vld [vmem:[%s3653_s4 + $0x168] sm:$0xff] }
 0x2d9   :  { %2172 = vmatprep.subr.bf16.mxu1 %v2171_v9  ;;  %v1214_v9 = vld [vmem:[%s3653_s4 + $0x60] sm:$0xff] }
 0x2da   :  { %v2209_v11 = vpack.c.bf16 %v1215_v10, %v1214_v9  ;;  %v1265_v9 = vld [vmem:[%s3653_s4 + $0x1f8] sm:$0xff] }
 0x2dc   :  { %2174 = vmatpush1.bf16.msra.mxu1 %v2173_v14  ;;  %v2211_v14 = vpack.c.bf16 %v1233_v13, %v1232_v12  ;;  %v1249_v12 = vld [vmem:[%s3653_s4 + $0x178] sm:$0xff] }
 0x2dd   :  { %2176 = vmatprep.subr.bf16.mxu1 %v2175_v15  ;;  %v1216_v15 = vld [vmem:[%s3653_s4 + $0x70] sm:$0xff] }
 0x2de   :  { %v2213_v17 = vpack.c.bf16 %v1217_v16, %v1216_v15  ;;  %v1553_v15 = vld [vmem:[%s3655_s6 + $0x88] sm:$0xff] }
 0x2e0   :  { %2178 = vmatpush1.bf16.msra.mxu1 %v2177_v21  ;;  %v2247_v21 = vpack.c.bf16 %v1451_v19, %v1450_v18  ;;  %v3348_v18 = vld [vmem:[#allocation7] sm:$0xff] }
 0x2e1   :  { %2180 = vmatprep.subr.bf16.mxu1 %v2179_v26  ;;  %v1250_v26 = vld [vmem:[%s3653_s4 + $0x180] sm:$0xff]  ;;  %v903_v19 = vrot.slane %v3348_v18, %v3118_v27 }
 0x2e2   :  { %v2215_v28 = vpack.c.bf16 %v1251_v24, %v1250_v26 }
 0x2e4   :  { %2182 = vmatpush1.bf16.msra.mxu1 %v2181_v29  ;;  %v1234_v29 = vld [vmem:[%s3653_s4 + $0x100] sm:$0xff] }
 0x2e5   :  { %v2217_v31 = vpack.c.bf16 %v1235_v30, %v1234_v29  ;;  %2216 = vmatprep.subr.bf16.mxu1 %v2215_v28 }
 0x2e7   :  { %1052 = vmatmul.mubr.f32.vlgmr.msra.gmra.mrb[4].mxu1 %v3137_v52  ;;  %v1220_v52 = vld [vmem:[%s3653_s4 + $0x90] sm:$0xff] }
 0x2e8   :  { %v2187_v37 = vpack.c.bf16 %v1221_v5, %v1220_v52  ;;  %2218 = vmatpush3.bf16.msra.mxu1 %v2217_v31  ;;  %v1237_v52 = vld [vmem:[%s3653_s4 + $0x118] sm:$0xff] }
 0x2e9   :  { %v2221_v5 = vpack.c.bf16 %v1237_v52, %v1236_v34  ;;  %2220 = vmatprep.subr.bf16.mxu1 %v2219_v33 }
 0x2ea   :  { %2188 = vmatprep.subr.bf16.mxu0 %v2187_v37  ;;  %v1254_v37 = vld [vmem:[%s3653_s4 + $0x1a0] sm:$0xff] }
 0x2eb   :  { %2190 = vmatpush3.bf16.msra.mxu0 %v2189_v40  ;;  %v2223_v39 = vpack.c.bf16 %v1255_v38, %v1254_v37  ;;  %v1238_v40 = vld [vmem:[%s3653_s4 + $0x120] sm:$0xff] }
 0x2ec   :  { %2192 = vmatprep.subr.bf16.mxu0 %v2191_v42  ;;  %2222 = vmatpush3.bf16.msra.mxu1 %v2221_v5  ;;  %v2225_v44 = vpack.c.bf16 %v1239_v41, %v1238_v40  ;;  %v1256_v42 = vld [vmem:[%s3653_s4 + $0x1b0] sm:$0xff] }
 0x2ed   :  { %2224 = vmatprep.subr.bf16.mxu1 %v2223_v39  ;;  %v2227_v36 = vpack.c.bf16 %v1257_v43, %v1256_v42 }
 0x2ef   :  { %2194 = vmatpush3.bf16.msra.mxu0 %v2193_v45  ;;  %v1240_v45 = vld [vmem:[%s3653_s4 + $0x130] sm:$0xff] }
 0x2f0   :  { %2196 = vmatprep.subr.bf16.mxu0 %v2195_v50  ;;  %2226 = vmatpush3.bf16.msra.mxu1 %v2225_v44  ;;  %v2229_v49 = vpack.c.bf16 %v1241_v48, %v1240_v45  ;;  %v1258_v50 = vld [vmem:[%s3653_s4 + $0x1c0] sm:$0xff] }
 0x2f1   :  { %2228 = vmatprep.subr.bf16.mxu1 %v2227_v36  ;;  %v2231_v54 = vpack.c.bf16 %v1259_v53, %v1258_v50 }
 0x2f3   :  { %2198 = vmatpush3.bf16.msra.mxu0 %v2197_v47  ;;  %v1242_v47 = vld [vmem:[%s3653_s4 + $0x140] sm:$0xff] }
 0x2f4   :  { %2200 = vmatprep.subr.bf16.mxu0 %v2199_v57  ;;  %2230 = vmatpush3.bf16.msra.mxu1 %v2229_v49  ;;  %v2233_v56 = vpack.c.bf16 %v1243_v55, %v1242_v47  ;;  %v1260_v57 = vld [vmem:[%s3653_s4 + $0x1d0] sm:$0xff] }
 0x2f5   :  { %2232 = vmatprep.subr.bf16.mxu1 %v2231_v54  ;;  %v2235_v59 = vpack.c.bf16 %v1261_v58, %v1260_v57 }
 0x2f7   :  { %2202 = vmatpush3.bf16.msra.mxu0 %v2201_v60  ;;  %v1244_v60 = vld [vmem:[%s3653_s4 + $0x150] sm:$0xff] }
 0x2f8   :  { %2204 = vmatprep.subr.bf16.mxu0 %v2203_v63  ;;  %2234 = vmatpush3.bf16.msra.mxu1 %v2233_v56  ;;  %v2237_v62 = vpack.c.bf16 %v1245_v61, %v1244_v60  ;;  %v1262_v63 = vld [vmem:[%s3653_s4 + $0x1e0] sm:$0xff] }
 0x2f9   :  { %2236 = vmatprep.subr.bf16.mxu1 %v2235_v59  ;;  %v2239_v1 = vpack.c.bf16 %v1263_v0, %v1262_v63 }
 0x2fb   :  { %2206 = vmatpush3.bf16.msra.mxu0 %v2205_v3  ;;  %v1246_v3 = vld [vmem:[%s3653_s4 + $0x160] sm:$0xff] }
 0x2fc   :  { %2208 = vmatprep.subr.bf16.mxu0 %v2207_v8  ;;  %2238 = vmatpush3.bf16.msra.mxu1 %v2237_v62  ;;  %v2241_v7 = vpack.c.bf16 %v1247_v4, %v1246_v3  ;;  %v1264_v8 = vld [vmem:[%s3653_s4 + $0x1f0] sm:$0xff] }
 0x2fd   :  { %2240 = vmatprep.subr.bf16.mxu1 %v2239_v1  ;;  %v2243_v10 = vpack.c.bf16 %v1265_v9, %v1264_v8 }
 0x2ff   :  { %2210 = vmatpush3.bf16.msra.mxu0 %v2209_v11  ;;  %v1248_v11 = vld [vmem:[%s3653_s4 + $0x170] sm:$0xff] }
 0x300   :  { %2212 = vmatprep.subr.bf16.mxu0 %v2211_v14  ;;  %2242 = vmatpush3.bf16.msra.mxu1 %v2241_v7  ;;  %v2245_v13 = vpack.c.bf16 %v1249_v12, %v1248_v11  ;;  %v1552_v14 = vld [vmem:[%s3655_s6 + $0x80] sm:$0xff]  ;;  %v3361_v11 = vsub.s32 6, %v2853_v22 }
 0x301   :  { %2244 = vmatprep.subr.bf16.mxu1 %v2243_v10  ;;  %v2279_v16 = vpack.c.bf16 %v1553_v15, %v1552_v14 }
 0x303   :  { %2214 = vmatpush3.bf16.msra.mxu0 %v2213_v17  ;;  %v3346_v17 = vsub.s32 5, %v2853_v22 }
 0x304   :  { %2248 = vmatprep.subr.bf16.mxu0 %v2247_v21  ;;  %2246 = vmatpush3.bf16.msra.mxu1 %v2245_v13  ;;  %v3352_v21 = vld [vmem:[#allocation7 + $0x8] sm:$0xff]  ;;  %v3364_v13 = vsub.s32 7, %v2853_v22  ;;  %v1434_v22 = vld [vmem:[%s3654_s5] sm:$0xff] }
 0x305   :  { %2280 = vmatprep.subr.bf16.mxu1 %v2279_v16  ;;  %v907_v26 = vrot.slane %v3352_v21, %v3118_v27  ;;  %v1065_v24 = vrot.slane %v3348_v18, %v3346_v17  ;;  %v1069_v29 = vrot.slane %v3352_v21, %v3346_v17 }
 0x37a   :  { %v982_v28 = vpop.f32.mrb[2].mxu1 }
 0x37b   :  { %v983_v30 = vadd.f32 %v982_v28, %v903_v19  ;;  %v984_v31 = vpop.f32.mrb[3].mxu1 }
 0x37c   :  { %v985_v20 = vadd.f32 %v984_v31, %v907_v26 }
 0x37d   :  { %vm1058_vm5 = vcmp.ge.f32.partialorder %v983_v30, 0.0  ;;  %v1078_v32 = vmul.f32 %v1065_v24, %v983_v30  ;;  %v1189_v24 = vrot.slane %v3352_v21, %v3364_v13 }
 0x37e   :  { %vm1059_vm6 = vcmp.ge.f32.partialorder %v985_v20, 0.0  ;;  %v1079_v33 = vmul.f32 %v1069_v29, %v985_v20  ;;  %v1185_v29 = vrot.slane %v3348_v18, %v3364_v13 }
 0x37f   :  { %v1082_v34 = vsel %vm1058_vm5, %v983_v30, %v1078_v32  ;;  %v1435_v30 = vld [vmem:[%s3654_s5 + $0x8] sm:$0xff] }
 0x380   :  { %v1086_v52 = vrot.slane %v1082_v34, 4  ;;  %v1083_v5 = vsel %vm1059_vm6, %v985_v20, %v1079_v33  ;;  %v1452_v20 = vld [vmem:[%s3654_s5 + $0x90] sm:$0xff]  ;;  %v2249_v33 = vpack.c.bf16 %v1435_v30, %v1434_v22  ;;  %v1462_v30 = vld [vmem:[%s3654_s5 + $0xe0] sm:$0xff] }
 0x381   :  { %v1092_v37 = vrot.slane %v1083_v5, 4 }
 0x382   :  { %v1087_v38 = vadd.f32 %v1086_v52, %v1082_v34  ;;  %v1436_v52 = vld [vmem:[%s3654_s5 + $0x10] sm:$0xff] }
 0x383   :  { %v1093_v39 = vadd.f32 %v1092_v37, %v1083_v5  ;;  %v1454_v37 = vld [vmem:[%s3654_s5 + $0xa0] sm:$0xff] }
 0x384   :  { %v1088_v40 = vrot.slane %v1087_v38, 2 }
 0x385   :  { %v1094_v41 = vrot.slane %v1093_v39, 2 }
 0x386   :  { %v1089_v44 = vadd.f32 %v1088_v40, %v1087_v38  ;;  %v1455_v38 = vld [vmem:[%s3654_s5 + $0xa8] sm:$0xff] }
 0x387   :  { %v1095_v42 = vadd.f32 %v1094_v41, %v1093_v39  ;;  %v3398_v39 = vld [vmem:[#allocation7 + $0x10] sm:$0xff]  ;;  %v3403_v41 = vld [vmem:[#allocation7 + $0x18] sm:$0xff] }
 0x388   :  { %v1090_v43 = vrot.slane %v1089_v44, 1  ;;  %v911_v40 = vrot.slane %v3398_v39, %v3118_v27 }
 0x389   :  { %v1096_v36 = vrot.slane %v1095_v42, 1 }
 0x38a   :  { %v1091_v45 = vadd.f32 %v1090_v43, %v1089_v44  ;;  %v915_v44 = vrot.slane %v3403_v41, %v3118_v27  ;;  %v1073_v43 = vrot.slane %v3398_v39, %v3346_v17 }
 0x38b   :  { %v1097_v48 = vadd.f32 %v1096_v36, %v1095_v42  ;;  %v2255_v36 = vpack.c.bf16 %v1455_v38, %v1454_v37  ;;  %v1464_v37 = vld [vmem:[%s3654_s5 + $0xf0] sm:$0xff]  ;;  %v1465_v38 = vld [vmem:[%s3654_s5 + $0xf8] sm:$0xff] }
 0x38c   :  { %v1110_v49 = vmul.f32 0.125, %v1091_v45  ;;  %v1438_v45 = vld [vmem:[%s3654_s5 + $0x20] sm:$0xff] }
 0x38d   :  { %v1111_v50 = vmul.f32 0.125, %v1097_v48  ;;  %v1439_v48 = vld [vmem:[%s3654_s5 + $0x28] sm:$0xff] }
 0x38e   :  { %v1114_v53 = vsub.f32 %v1082_v34, %v1110_v49  ;;  %v1077_v49 = vrot.slane %v3403_v41, %v3346_v17  ;;  %v1440_v17 = vld [vmem:[%s3654_s5 + $0x30] sm:$0xff] }
 0x38f   :  { %v1115_v54 = vsub.f32 %v1083_v5, %v1111_v50  ;;  %v1437_v5 = vld [vmem:[%s3654_s5 + $0x18] sm:$0xff]  ;;  %v1456_v50 = vld [vmem:[%s3654_s5 + $0xb0] sm:$0xff] }
 0x390   :  { %v1118_v47 = vmul.f32 %v1114_v53, %v1114_v53  ;;  %v2253_v42 = vpack.c.bf16 %v1437_v5, %v1436_v52  ;;  %v1447_v52 = vld [vmem:[%s3654_s5 + $0x68] sm:$0xff] }
 0x391   :  { %v1119_v55 = vmul.f32 %v1115_v54, %v1115_v54 }
 0x392   :  { %v1122_v56 = vrot.slane %v1118_v47, 4 }
 0x393   :  { %v1128_v57 = vrot.slane %v1119_v55, 4 }
 0x394   :  { %v1123_v58 = vadd.f32 %v1122_v56, %v1118_v47  ;;  %v2257_v56 = vpack.c.bf16 %v1439_v48, %v1438_v45  ;;  %v1448_v45 = vld [vmem:[%s3654_s5 + $0x70] sm:$0xff]  ;;  %v1449_v48 = vld [vmem:[%s3654_s5 + $0x78] sm:$0xff] }
 0x395   :  { %v1129_v59 = vadd.f32 %v1128_v57, %v1119_v55 }
 0x396   :  { %v1124_v60 = vrot.slane %v1123_v58, 2 }
 0x397   :  { %v1130_v61 = vrot.slane %v1129_v59, 2 }
 0x398   :  { %v1125_v62 = vadd.f32 %v1124_v60, %v1123_v58 }
 0x399   :  { %v1131_v63 = vadd.f32 %v1130_v61, %v1129_v59  ;;  %v1441_v59 = vld [vmem:[%s3654_s5 + $0x38] sm:$0xff]  ;;  %v1458_v61 = vld [vmem:[%s3654_s5 + $0xc0] sm:$0xff] }
 0x39a   :  { %v1126_v0 = vrot.slane %v1125_v62, 1 }
 0x39b   :  { %v1132_v1 = vrot.slane %v1131_v63, 1 }
 0x39c   :  { %v1127_v3 = vadd.f32 %v1126_v0, %v1125_v62  ;;  %v1459_v62 = vld [vmem:[%s3654_s5 + $0xc8] sm:$0xff] }
 0x39d   :  { %v1133_v4 = vadd.f32 %v1132_v1, %v1131_v63 }
 0x39e   :  { %v1146_v7 = vmul.f32 0.125, %v1127_v3  ;;  %v2261_v3 = vpack.c.bf16 %v1441_v59, %v1440_v17 }
 0x39f   :  { %v1147_v8 = vmul.f32 0.125, %v1133_v4 }
 0x3a0   :  { %v1150_v9 = vadd.f32 1e-05, %v1146_v7  ;;  %v2263_v7 = vpack.c.bf16 %v1459_v62, %v1458_v61 }
 0x3a1   :  { %v1151_v10 = vadd.f32 1e-05, %v1147_v8  ;;  %v1442_v8 = vld [vmem:[%s3654_s5 + $0x40] sm:$0xff] }
 0x3a2   :  { %2337 = vrsqrt.f32 %v1150_v9  ;;  %v1443_v9 = vld [vmem:[%s3654_s5 + $0x48] sm:$0xff] }
 0x3a3   :  { %2339 = vrsqrt.f32 %v1151_v10 }
 0x3ac   :  { %v2338_v12 = vpop.eup %2337 }
 0x3ad   :  { %v2340_v14 = vpop.eup %2339  ;;  %v1158_v15 = vmul.f32 %v3348_v18, %v2338_v12  ;;  %v1460_v12 = vld [vmem:[%s3654_s5 + $0xd0] sm:$0xff] }
 0x3ae   :  { %v1159_v16 = vmul.f32 %v3352_v21, %v2340_v14  ;;  %v1453_v21 = vld [vmem:[%s3654_s5 + $0x98] sm:$0xff] }
 0x3af   :  { %v1165_v19 = vrot.slane %v1158_v15, %v3361_v11  ;;  %v2251_v34 = vpack.c.bf16 %v1453_v21, %v1452_v20  ;;  %v1461_v14 = vld [vmem:[%s3654_s5 + $0xd8] sm:$0xff] }
 0x3b0   :  { %v1169_v26 = vrot.slane %v1159_v16, %v3361_v11 }
 0x3b1   :  { %v1178_v28 = vmul.f32 %v1165_v19, %v1114_v53  ;;  %v1457_v53 = vld [vmem:[%s3654_s5 + $0xb8] sm:$0xff]  ;;  %v2265_v19 = vpack.c.bf16 %v1443_v9, %v1442_v8 }
 0x3b2   :  { %v1179_v31 = vmul.f32 %v1169_v26, %v1115_v54  ;;  %v2259_v58 = vpack.c.bf16 %v1457_v53, %v1456_v50 }
 0x3b3   :  { %v1198_v18 = vadd.f32 %v1185_v29, %v1178_v28  ;;  %v1444_v28 = vld [vmem:[%s3654_s5 + $0x50] sm:$0xff]  ;;  %v1445_v29 = vld [vmem:[%s3654_s5 + $0x58] sm:$0xff] }
 0x3b4   :  { %v1199_v32 = vadd.f32 %v1189_v24, %v1179_v31  ;;  %v2267_v24 = vpack.c.bf16 %v1461_v14, %v1460_v12  ;;  %v1463_v31 = vld [vmem:[%s3654_s5 + $0xe8] sm:$0xff] }
 0x3b6   :  { %1337 = vmatprep.mubr.f32.mxu0 %v1199_v32  ;;  %v2269_v32 = vpack.c.bf16 %v1445_v29, %v1444_v28  ;;  %v1536_v28 = vld [vmem:[%s3655_s6] sm:$0xff]  ;;  %v1537_v29 = vld [vmem:[%s3655_s6 + $0x8] sm:$0xff] }
 0x3b7   :  { %1338 = vmatmul.mubr.f32.vlgmr.msra.gmra.mrb[4].mxu0 %v1198_v18  ;;  %v2271_v18 = vpack.c.bf16 %v1463_v31, %v1462_v30  ;;  %v1554_v30 = vld [vmem:[%s3655_s6 + $0x90] sm:$0xff] }
 0x3b8   :  { %2250 = vmatpush3.bf16.msra.mxu0 %v2249_v33  ;;  %1530 = vmatprep.mubr.f32.mxu0 %v3135_v51 }
 0x3b9   :  { %2252 = vmatprep.subr.bf16.mxu0 %v2251_v34  ;;  %v1446_v34 = vld [vmem:[%s3654_s5 + $0x60] sm:$0xff] }
 0x3ba   :  { %v1053_v51 = vpop.f32.mrb[4].mxu1 }
 0x3bb   :  { %v1054_v54 = vadd.f32 %v1053_v51, %v911_v40  ;;  %v1055_v47 = vpop.f32.mrb[5].mxu1  ;;  %v1417_v51 = vrot.slane %v3106_v46, %v2893_v6 }
 0x3bc   :  { %v1056_v55 = vadd.f32 %v1055_v47, %v915_v44  ;;  %2254 = vmatpush3.bf16.msra.mxu0 %v2253_v42  ;;  %v2273_v42 = vpack.c.bf16 %v1447_v52, %v1446_v34 }
 0x3bd   :  { %vm1060_vm7 = vcmp.ge.f32.partialorder %v1054_v54, 0.0  ;;  %v1080_v57 = vmul.f32 %v1073_v43, %v1054_v54  ;;  %2256 = vmatprep.subr.bf16.mxu0 %v2255_v36  ;;  %v2275_v36 = vpack.c.bf16 %v1465_v38, %v1464_v37  ;;  %v1541_v37 = vld [vmem:[%s3655_s6 + $0x28] sm:$0xff]  ;;  %v1558_v38 = vld [vmem:[%s3655_s6 + $0xb0] sm:$0xff] }
 0x3be   :  { %vm1061_vm8 = vcmp.ge.f32.partialorder %v1056_v55, 0.0  ;;  %v1081_v60 = vmul.f32 %v1077_v49, %v1056_v55 }
 0x3bf   :  { %v1084_v63 = vsel %vm1060_vm7, %v1054_v54, %v1080_v57  ;;  %v2277_v54 = vpack.c.bf16 %v1449_v48, %v1448_v45  ;;  %v1560_v45 = vld [vmem:[%s3655_s6 + $0xc0] sm:$0xff]  ;;  %v1561_v48 = vld [vmem:[%s3655_s6 + $0xc8] sm:$0xff] }
 0x3c0   :  { %v1098_v0 = vrot.slane %v1084_v63, 4  ;;  %v1085_v1 = vsel %vm1061_vm8, %v1056_v55, %v1081_v60  ;;  %2258 = vmatpush3.bf16.msra.mxu0 %v2257_v56  ;;  %v1422_v55 = vmul.f32 %v1417_v51, %v3126_v35  ;;  %v1427_v56 = vrot.slane %v3106_v46, %v3118_v27 }
 0x3c1   :  { %v1104_v4 = vrot.slane %v1085_v1, 4  ;;  %2260 = vmatprep.subr.bf16.mxu0 %v2259_v58 }
 0x3c2   :  { %v1099_v10 = vadd.f32 %v1098_v0, %v1084_v63  ;;  %v1432_v60 = vadd.f32 %v1427_v56, %v1422_v55 }
 0x3c3   :  { %v1105_v15 = vadd.f32 %v1104_v4, %v1085_v1 }
 0x3c4   :  { %v1100_v16 = vrot.slane %v1099_v10, 2  ;;  %2262 = vmatpush3.bf16.msra.mxu0 %v2261_v3 }
 0x3c5   :  { %v1106_v26 = vrot.slane %v1105_v15, 2  ;;  %2264 = vmatprep.subr.bf16.mxu0 %v2263_v7 }
 0x3c6   :  { %v1101_v22 = vadd.f32 %v1100_v16, %v1099_v10  ;;  %v1193_v16 = vrot.slane %v3398_v39, %v3364_v13 }
 0x3c7   :  { %v1107_v20 = vadd.f32 %v1106_v26, %v1105_v15  ;;  %v1197_v26 = vrot.slane %v3403_v41, %v3364_v13 }
 0x3c8   :  { %v1102_v21 = vrot.slane %v1101_v22, 1  ;;  %2266 = vmatpush3.bf16.msra.mxu0 %v2265_v19 }
 0x3c9   :  { %v1108_v33 = vrot.slane %v1107_v20, 1  ;;  %2268 = vmatprep.subr.bf16.mxu0 %v2267_v24 }
 0x3ca   :  { %v1103_v5 = vadd.f32 %v1102_v21, %v1101_v22  ;;  %v1539_v21 = vld [vmem:[%s3655_s6 + $0x18] sm:$0xff] }
 0x3cb   :  { %v1109_v40 = vadd.f32 %v1108_v33, %v1107_v20  ;;  %v1538_v20 = vld [vmem:[%s3655_s6 + $0x10] sm:$0xff]  ;;  %v1557_v33 = vld [vmem:[%s3655_s6 + $0xa8] sm:$0xff] }
 0x3cc   :  { %v1112_v44 = vmul.f32 0.125, %v1103_v5  ;;  %2270 = vmatpush3.bf16.msra.mxu0 %v2269_v32  ;;  %v1556_v32 = vld [vmem:[%s3655_s6 + $0xa0] sm:$0xff]  ;;  %v2285_v34 = vpack.c.bf16 %v1539_v21, %v1538_v20 }
 0x3cd   :  { %v1113_v43 = vmul.f32 0.125, %v1109_v40  ;;  %2272 = vmatprep.subr.bf16.mxu0 %v2271_v18  ;;  %v2351_v18 = vld [vmem:[#allocation8 + $0x8] sm:$0xff]  ;;  %v2287_v52 = vpack.c.bf16 %v1557_v33, %v1556_v32  ;;  %v1540_v5 = vld [vmem:[%s3655_s6 + $0x20] sm:$0xff]  ;;  %v1559_v40 = vld [vmem:[%s3655_s6 + $0xb8] sm:$0xff] }
 0x3ce   :  { %v1116_v49 = vsub.f32 %v1084_v63, %v1112_v44  ;;  %v2289_v44 = vpack.c.bf16 %v1541_v37, %v1540_v5 }
 0x3cf   :  { %v1117_v50 = vsub.f32 %v1085_v1, %v1113_v43  ;;  %v1542_v43 = vld [vmem:[%s3655_s6 + $0x30] sm:$0xff] }
 0x3d0   :  { %v1120_v53 = vmul.f32 %v1116_v49, %v1116_v49  ;;  %2274 = vmatpush3.bf16.msra.mxu0 %v2273_v42  ;;  %v2291_v42 = vpack.c.bf16 %v1559_v40, %v1558_v38 }
 0x3d1   :  { %v1121_v47 = vmul.f32 %v1117_v50, %v1117_v50  ;;  %2276 = vmatprep.subr.bf16.mxu0 %v2275_v36  ;;  %v1543_v36 = vld [vmem:[%s3655_s6 + $0x38] sm:$0xff] }
 0x3d2   :  { %v1134_v57 = vrot.slane %v1120_v53, 4  ;;  %v2293_v51 = vpack.c.bf16 %v1543_v36, %v1542_v43 }
 0x3d3   :  { %v1140_v58 = vrot.slane %v1121_v47, 4 }
 0x3d4   :  { %v1135_v17 = vadd.f32 %v1134_v57, %v1120_v53  ;;  %2278 = vmatpush3.bf16.msra.mxu0 %v2277_v54  ;;  %v1545_v53 = vld [vmem:[%s3655_s6 + $0x48] sm:$0xff]  ;;  %v1562_v54 = vld [vmem:[%s3655_s6 + $0xd0] sm:$0xff] }
 0x3d5   :  { %v1141_v59 = vadd.f32 %v1140_v58, %v1121_v47  ;;  %v1563_v47 = vld [vmem:[%s3655_s6 + $0xd8] sm:$0xff]  ;;  %v1546_v57 = vld [vmem:[%s3655_s6 + $0x50] sm:$0xff] }
 0x3d6   :  { %v1136_v61 = vrot.slane %v1135_v17, 2  ;;  %v2299_v56 = vpack.c.bf16 %v1563_v47, %v1562_v54  ;;  %v1547_v58 = vld [vmem:[%s3655_s6 + $0x58] sm:$0xff] }
 0x3d7   :  { %v1142_v62 = vrot.slane %v1141_v59, 2  ;;  %1531 = vmatmul.mubr.f32.vlgmr.msra.gmra.mrb[6].mxu0 %v1432_v60  ;;  %v2301_v60 = vpack.c.bf16 %v1547_v58, %v1546_v57 }
 0x3d8   :  { %v1137_v63 = vadd.f32 %v1136_v61, %v1135_v17  ;;  %v1564_v17 = vld [vmem:[%s3655_s6 + $0xe0] sm:$0xff] }
 0x3d9   :  { %v1143_v0 = vadd.f32 %v1142_v62, %v1141_v59  ;;  %v1565_v59 = vld [vmem:[%s3655_s6 + $0xe8] sm:$0xff]  ;;  %v1548_v62 = vld [vmem:[%s3655_s6 + $0x60] sm:$0xff] }
 0x3da   :  { %v1138_v1 = vrot.slane %v1137_v63, 1  ;;  %v2303_v61 = vpack.c.bf16 %v1565_v59, %v1564_v17 }
 0x3db   :  { %v1144_v3 = vrot.slane %v1143_v0, 1 }
 0x3dc   :  { %v1139_v4 = vadd.f32 %v1138_v1, %v1137_v63  ;;  %v1549_v63 = vld [vmem:[%s3655_s6 + $0x68] sm:$0xff]  ;;  %v1567_v1 = vld [vmem:[%s3655_s6 + $0xf8] sm:$0xff] }
 0x3dd   :  { %v1145_v7 = vadd.f32 %v1144_v3, %v1143_v0  ;;  %v1566_v0 = vld [vmem:[%s3655_s6 + $0xf0] sm:$0xff]  ;;  %v2305_v3 = vpack.c.bf16 %v1549_v63, %v1548_v62 }
 0x3de   :  { %v1148_v8 = vmul.f32 0.125, %v1139_v4  ;;  %v2307_v4 = vpack.c.bf16 %v1567_v1, %v1566_v0 }
 0x3df   :  { %v1149_v35 = vmul.f32 0.125, %v1145_v7  ;;  %v1550_v7 = vld [vmem:[%s3655_s6 + $0x70] sm:$0xff] }
 0x3e0   :  { %v1152_v9 = vadd.f32 1e-05, %v1148_v8  ;;  %v1551_v8 = vld [vmem:[%s3655_s6 + $0x78] sm:$0xff] }
 0x3e1   :  { %v1153_v10 = vadd.f32 1e-05, %v1149_v35  ;;  %v2309_v35 = vpack.c.bf16 %v1551_v8, %v1550_v7 }
 0x3e2   :  { %2341 = vrsqrt.f32 %v1152_v9  ;;  %v2352_v9 = vld [vmem:[#allocation8] sm:$0xff] }
 0x3e3   :  { %2343 = vrsqrt.f32 %v1153_v10 }
 0x3ec   :  { %v2342_v46 = vpop.eup %2341 }
 0x3ed   :  { %v2344_v27 = vpop.eup %2343  ;;  %v1160_v12 = vmul.f32 %v3398_v39, %v2342_v46 }
 0x3ee   :  { %v1161_v14 = vmul.f32 %v3403_v41, %v2344_v27  ;;  %v2281_v41 = vpack.c.bf16 %v1537_v29, %v1536_v28 }
 0x3ef   :  { %v1173_v15 = vrot.slane %v1160_v12, %v3361_v11 }
 0x3f0   :  { %v1177_v19 = vrot.slane %v1161_v14, %v3361_v11  ;;  %v1555_v11 = vld [vmem:[%s3655_s6 + $0x98] sm:$0xff] }
 0x3f1   :  { %v1180_v24 = vmul.f32 %v1173_v15, %v1116_v49  ;;  %v2283_v31 = vpack.c.bf16 %v1555_v11, %v1554_v30  ;;  %v2295_v49 = vpack.c.bf16 %v1561_v48, %v1560_v45 }
 0x3f2   :  { %v1181_v22 = vmul.f32 %v1177_v19, %v1117_v50  ;;  %v1544_v50 = vld [vmem:[%s3655_s6 + $0x40] sm:$0xff] }
 0x3f3   :  { %v1200_v39 = vadd.f32 %v1193_v16, %v1180_v24  ;;  %v2297_v55 = vpack.c.bf16 %v1545_v53, %v1544_v50  ;;  %v1753_v16 = vld [vmem:[%s3658_s9] ss:$0 sm:$0xff]  ;;  %s2523_s9 = smov [#allocation9]  }
 0x3f4   :  { %v1201_v13 = vadd.f32 %v1197_v26, %v1181_v22  ;;  %v94_v22 = vld [vmem:[%s3659_s10] sm:$0xf]  ;;  %s1710_s10 = sshll.u32 %s2523_s9, 4  ;;  %s1711_s10 = int_to_ptr.vmem [resolvable:$true] %s1710_s10 }
 0x3f5   :  { %v1571_v11 = vrot.slane %v94_v22, %v2856_v23  ;;  %v1672_v53 = vrot.slane %v94_v22, %v2890_v2  ;;  %v1677_v47 = vrot.slane %v94_v22, %v2893_v6  ;;  %s2419_s8 = scalar_lea.vmem %s1711_s10, 128  ;;  %p2424_p11 = scmp.lt.s32.totalorder %s1711_s10, %s1711_s10 }
 0x3f6   :  { %1407 = vmatprep.mubr.f32.mxu1 %v1201_v13  ;;  %p2420_p10 = scmp.ne.s32.totalorder %s1711_s10, %s2419_s8  ;;  %p2425_p12 = scmp.lt.s32.totalorder %s2419_s8, %s2419_s8 }
 0x3f7   :  { %1408 = vmatmul.mubr.f32.vlgmr.msra.gmra.mrb[6].mxu1 %v1200_v39 }
 0x3f8   :  { %2282 = vmatpush3.bf16.msra.mxu1 %v2281_v41  ;;  %1636 = vmatprep.mubr.f32.mxu1 %v2351_v18  ;;  %p2426_p13 = por %p2425_p12, %p2424_p11 }
 0x3f9   :  { %2284 = vmatprep.subr.bf16.mxu1 %v2283_v31 }
 0x3fa   :  { %p2427_p0 = pnand %p2426_p13, %p2420_p10 }
 0x3fc   :  { %2286 = vmatpush3.bf16.msra.mxu1 %v2285_v34 }
 0x3fd   :  { %2288 = vmatprep.subr.bf16.mxu1 %v2287_v52 }
 0x400   :  { %2290 = vmatpush3.bf16.msra.mxu1 %v2289_v44 }
 0x401   :  { %2292 = vmatprep.subr.bf16.mxu1 %v2291_v42 }
 0x404   :  { %2294 = vmatpush3.bf16.msra.mxu1 %v2293_v51 }
 0x405   :  { %2296 = vmatprep.subr.bf16.mxu1 %v2295_v49 }
 0x408   :  { %2298 = vmatpush3.bf16.msra.mxu1 %v2297_v55 }
 0x409   :  { %2300 = vmatprep.subr.bf16.mxu1 %v2299_v56 }
 0x40c   :  { %2302 = vmatpush3.bf16.msra.mxu1 %v2301_v60 }
 0x40d   :  { %2304 = vmatprep.subr.bf16.mxu1 %v2303_v61 }
 0x410   :  { %2306 = vmatpush3.bf16.msra.mxu1 %v2305_v3 }
 0x411   :  { %2308 = vmatprep.subr.bf16.mxu1 %v2307_v4 }
 0x414   :  { %2310 = vmatpush3.bf16.msra.mxu1 %v2309_v35 }
 0x417   :  { %1637 = vmatmul.mubr.f32.vlgmr.msra.gmra.mrb[8].mxu1 %v2352_v9 }
 0x48a   :  { %v1787_v10 = vpop.f32.mrb[4].mxu0 }
 0x48b   :  { %v1788_v46 = vpop.f32.mrb[5].mxu0 }
 0x48c   :  { %v1789_v27 = vadd.f32 %v1788_v46, %v1787_v10 }
 0x48e   :  { %v1340_v24 = vadd.f32 %v1789_v27, %v1753_v16 }
 0x4aa   :  { %v1857_v12 = vpop.f32.mrb[6].mxu0 }
 0x4ab   :  { %v1858_v14 = vpop.f32.mrb[7].mxu0 }
 0x4ac   :  { %v3580_v15 = vadd.f32 %v1858_v14, %v1857_v12 }
 0x4ca   :  { %v1822_v19 = vpop.f32.mrb[6].mxu1 }
 0x4cb   :  { %v1823_v26 = vpop.f32.mrb[7].mxu1 }
 0x4cc   :  { %v1824_v28 = vadd.f32 %v1823_v26, %v1822_v19 }
 0x4ce   :  { %v1410_v29 = vadd.f32 %v1824_v28, %v1340_v24 }
 0x4d0   :  { %1413 = vst.msk [vmem:[#allocation9] sm:$0xff] %vm143_vm0, %v1410_v29 }
 0x4ea   :  { %v1892_v30 = vpop.f32.mrb[8].mxu1 }
 0x4eb   :  { %v1893_v39 = vpop.f32.mrb[9].mxu1 }
 0x4ec   :  { %v1894_v13 = vadd.f32 %v1893_v39, %v1892_v30 }
 0x4ee   :  { %v1639_v41 = vadd.f32 %v1894_v13, %v1571_v11 }
 0x4f0   :  { %v1643_v31 = vsel %vm143_vm0, %v1639_v41, 0.0  ;;  %1642 = vst.msk [vmem:[#allocation12] sm:$0xff] %vm143_vm0, %v1639_v41 }
 0x4f1   :  { %v1644_v20 = vrot.slane %v1643_v31, 4 }
 0x4f3   :  { %v1645_v21 = vadd.f32 %v1644_v20, %v1643_v31 }
 0x4f5   :  { %v1646_v32 = vrot.slane %v1645_v21, 2 }
 0x4f7   :  { %v1647_v33 = vadd.f32 %v1646_v32, %v1645_v21 }
 0x4f9   :  { %v1648_v18 = vrot.slane %v1647_v33, 1 }
 0x4fb   :  { %v1649_v34 = vadd.f32 %v1648_v18, %v1647_v33 }
 0x4fd   :  { %v1650_v52 = vmul.f32 0.125, %v1649_v34 }
 0x4ff   :  { %v1651_v5 = vsub.f32 %v1639_v41, %v1650_v52 }
 0x501   :  { %v1652_v37 = vmul.f32 %v1651_v5, %v1651_v5 }
 0x503   :  { %v1653_v38 = vsel %vm143_vm0, %v1652_v37, 0.0 }
 0x504   :  { %v1654_v40 = vrot.slane %v1653_v38, 4 }
 0x506   :  { %v1655_v23 = vadd.f32 %v1654_v40, %v1653_v38 }
 0x508   :  { %v1656_v44 = vrot.slane %v1655_v23, 2 }
 0x50a   :  { %v1657_v42 = vadd.f32 %v1656_v44, %v1655_v23 }
 0x50c   :  { %v1658_v43 = vrot.slane %v1657_v42, 1 }
 0x50e   :  { %v1659_v36 = vadd.f32 %v1658_v43, %v1657_v42 }
 0x510   :  { %v1660_v45 = vmul.f32 0.125, %v1659_v36 }
 0x512   :  { %v1661_v48 = vadd.f32 1e-05, %v1660_v45 }
 0x514   :  { %2345 = vrsqrt.f32 %v1661_v48 }
 0x51e   :  { %v2346_v51 = vpop.eup %2345 }
 0x51f   :  { %v1663_v49 = vmul.f32 %v2346_v51, %v94_v22 }
 0x521   :  { %v1667_v50 = vrot.slane %v1663_v49, %v2861_v25 }
 0x523   :  { %v1668_v54 = vmul.f32 %v1667_v50, %v1651_v5 }
 0x525   :  { %v1673_v55 = vadd.f32 %v1672_v53, %v1668_v54 }
 0x527   :  { %v1678_v56 = vmul.f32 %v1677_v47, %v1673_v55 }
 0x529   :  { %v1679_v57 = vsel %vm143_vm0, %v1678_v56, 0.0 }
 0x52a   :  { %1680 = vadd.xlane.f32.xlu0 %v1679_v57 }
 0x52b   :  { %2430 = shalt.err (!%p2427_p0)
}
 0x52c   :  { %s2431_s27 = scalar_lea.hbm %s3662_s13, 128 }
 0x52d   :  { %p2432_p1 = scmp.ne.s32.totalorder %s3662_s13, %s2431_s27  ;;  %p2435_p2 = scmp.lt.u32.totalorder %s2431_s27, %s3662_s13 }
 0x52f   :  { %p2437_p3 = pnand %p2435_p2, %p2432_p1 }
 0x531   :  { %2440 = shalt.err (!%p2437_p3)
}
 0x532   :  { %1713 = dma.vmem_to_hbm [thread:$0]  %s1711_s10, 128, %s3662_s13, [#allocation10]  }
 0x533   :  { %s2441_s28 = scalar_lea.vmem %s1701_s25, 256  ;;  %p2446_p5 = scmp.lt.s32.totalorder %s1701_s25, %s1701_s25 }
 0x534   :  { %p2442_p4 = scmp.ne.s32.totalorder %s1701_s25, %s2441_s28  ;;  %p2447_p6 = scmp.lt.s32.totalorder %s2441_s28, %s2441_s28 }
 0x536   :  { %p2448_p7 = por %p2447_p6, %p2446_p5 }
 0x538   :  { %p2449_p8 = pnand %p2448_p7, %p2442_p4 }
 0x53a   :  { %2452 = shalt.err (!%p2449_p8)
}
 0x53b   :  { %s2453_s19 = scalar_lea.hbm %s3661_s12, 256 }
 0x53c   :  { %p2454_p9 = scmp.ne.s32.totalorder %s3661_s12, %s2453_s19  ;;  %p2457_p10 = scmp.lt.u32.totalorder %s2453_s19, %s3661_s12 }
 0x53e   :  { %p2459_p11 = pnand %p2457_p10, %p2454_p9 }
 0x540   :  { %2462 = shalt.err (!%p2459_p11)
}
 0x541   :  { %1703 = dma.vmem_to_hbm [thread:$0]  %s1701_s25, 256, %s3661_s12, [#allocation4]  }
 0x542   :  { %s2525_s2 = smov [#allocation12]  }
 0x543   :  { %s1730_s6 = sshll.u32 %s2525_s2, 4  ;;  %s1731_s6 = int_to_ptr.vmem [resolvable:$true] %s1730_s6 }
 0x544   :  { %s2463_s23 = scalar_lea.vmem %s1731_s6, 128  ;;  %p2468_p13 = scmp.lt.s32.totalorder %s1731_s6, %s1731_s6 }
 0x545   :  { %p2464_p12 = scmp.ne.s32.totalorder %s1731_s6, %s2463_s23  ;;  %p2469_p0 = scmp.lt.s32.totalorder %s2463_s23, %s2463_s23 }
 0x547   :  { %p2470_p1 = por %p2469_p0, %p2468_p13 }
 0x549   :  { %p2471_p2 = pnand %p2470_p1, %p2464_p12 }
 0x54b   :  { %2474 = shalt.err (!%p2471_p2)
}
 0x54c   :  { %s2475_s24 = scalar_lea.hbm %s3664_s15, 128 }
 0x54d   :  { %p2476_p3 = scmp.ne.s32.totalorder %s3664_s15, %s2475_s24  ;;  %p2479_p4 = scmp.lt.u32.totalorder %s2475_s24, %s3664_s15 }
 0x54f   :  { %p2481_p5 = pnand %p2479_p4, %p2476_p3 }
 0x551   :  { %2484 = shalt.err (!%p2481_p5)
}
 0x552   :  { %1733 = dma.vmem_to_hbm [thread:$0]  %s1731_s6, 128, %s3664_s15, [#allocation13]   ;;  %vm1682_vm9 = vcmask 31744   ;;  %v1754_v25 = vld [vmem:[%s3660_s11] ss:$0 sm:$0xff]  ;;  %vm1692_vm10 = vcmask 39936  }
 0x553   :  { %s2526_s21 = smov [#allocation11]  }
 0x554   :  { %s1720_s7 = sshll.u32 %s2526_s21, 4  ;;  %s1721_s7 = int_to_ptr.vmem [resolvable:$true] %s1720_s7 }
 0x555   :  { %s2485_s30 = scalar_lea.vmem %s1721_s7, 128  ;;  %p2490_p7 = scmp.lt.s32.totalorder %s1721_s7, %s1721_s7 }
 0x556   :  { %p2486_p6 = scmp.ne.s32.totalorder %s1721_s7, %s2485_s30  ;;  %p2491_p8 = scmp.lt.s32.totalorder %s2485_s30, %s2485_s30 }
 0x558   :  { %p2492_p9 = por %p2491_p8, %p2490_p7 }
 0x55a   :  { %p2493_p10 = pnand %p2492_p9, %p2486_p6 }
 0x5b7   :  { %v1681_v2 = vpop.xlane.xlu0 %1680 }
 0x5b8   :  { %v1683_v6 = vsel %vm1682_vm9, %v3580_v15, %v1681_v2 }
 0x5b9   :  { %v1691_v58 = vadd.f32 %v1754_v25, %v1683_v6 }
 0x5bb   :  { %1693 = vst.msk [vmem:[#allocation11] sm:$0xff] %vm1692_vm10, %v1691_v58 }
 0x5bc   :  { %2496 = shalt.err (!%p2493_p10)
}
 0x5bd   :  { %s2497_s11 = scalar_lea.hbm %s3663_s14, 128 }
 0x5be   :  { %p2498_p11 = scmp.ne.s32.totalorder %s3663_s14, %s2497_s11  ;;  %p2501_p12 = scmp.lt.u32.totalorder %s2497_s11, %s3663_s14 }
 0x5c0   :  { %p2503_p13 = pnand %p2501_p12, %p2498_p11 }
 0x5c2   :  { %2506 = shalt.err (!%p2503_p13)
}
 0x5c3   :  { %1723 = dma.vmem_to_hbm [thread:$0]  %s1721_s7, 128, %s3663_s14, [#allocation10]  }
 0x5c4   :  { %2511 = dma.done.wait [#allocation4], 256  }
 0x5c5   :  { %2512 = vsyncadd [#allocation4], 4294967040 }
 0x5c6   :  { %2513 = dma.done.wait [#allocation10], 256  }
 0x5c7   :  { %2514 = vsyncadd [#allocation10], 4294967040 }
 0x5c8   :  { %2515 = dma.done.wait [#allocation13], 128  }
 0x5c9   :  { %2516 = vsyncadd [#allocation13], 4294967168 }
 0x5ca   :  { %1746 = vsyncpa [#allocation3], 1 }
 0x5cb   :  { %1747 = vsyncpa [#allocation6], 1 }
 0x5cc   :  { %1748 = vsyncpa [#allocation4], 1 }
 0x5cd   :  { %1749 = vsyncpa [#allocation10], 1 }
 0x5ce   :  { %1750 = vsyncpa [#allocation13], 1 }

</bundles_post_ra>
